<compile_context>
chip_gen: v5e
topology: v5e:2x2
jax: 0.10.0
libtpu: 0.0.40
codegen_flags: <defaults>
</compile_context>

<pallas_src>
import functools

import jax
import jax.numpy as jnp
from jax.experimental import pallas as pl
from jax.experimental.pallas import tpu as pltpu


# ----------------------- fused LSTM-stack + FC kernel -------------------------
def _make_fused_lstm_fc_kernel(T, B, Bp, input_size, hidden_sizes, num_classes):
    """Kernel closure for a fixed (static) network configuration.

    Ref layout (inputs then output, pallas_call order):
      x_ref                     : (T*Bp, input_size)  bf16, time-major, batch padded
      per layer l (3 refs each) : wih_t (I_l,4H_l) bf16, whh_t (H_l,4H_l) bf16, bias (1,4H_l) f32
      fcw_ref                   : (H_last, num_classes) bf16
      fcb_ref                   : (1, num_classes) f32
      o_ref (output)            : (B, num_classes) f32
    """
    L = len(hidden_sizes)
    f32 = jnp.float32
    bf16 = jnp.bfloat16

    def lstm_step(gates, c_prev, H):
        # 3 EUP round trips (full-width sigmoid, tanh on the g band, tanh(c))
        # instead of 5 separate per-gate transcendental calls.
        sig = jax.nn.sigmoid(gates)                 # (Bp, 4H) full vreg width
        g_g = jnp.tanh(gates[:, 2 * H:3 * H])
        i_g = sig[:, 0 * H:1 * H]
        f_g = sig[:, 1 * H:2 * H]
        o_g = sig[:, 3 * H:4 * H]
        c_new = f_g * c_prev + i_g * g_g
        h_new = o_g * jnp.tanh(c_new)
        return h_new, c_new

    def kernel(*refs):
        x_ref = refs[0]
        layer_refs = [refs[1 + 3 * l: 4 + 3 * l] for l in range(L)]
        fcw_ref = refs[1 + 3 * L]
        fcb_ref = refs[2 + 3 * L]
        o_ref = refs[3 + 3 * L]

        # ---- Layer-0 input projection hoisted over ALL timesteps: one MXU
        # matmul off the sequential critical path. bf16 operands, f32 accum.
        wih0_ref, whh0_ref, b0_ref = layer_refs[0]
        gx0 = jnp.dot(x_ref[...], wih0_ref[...],
                      preferred_element_type=f32) + b0_ref[...]     # (T*Bp, 4H0)

        # ---- Weights loaded once, reused (vreg/VMEM resident) every step.
        whh = [layer_refs[l][1][...] for l in range(L)]              # (H_l, 4H_l)
        wih = [None] + [layer_refs[l][0][...] for l in range(1, L)]  # (H_{l-1}, 4H_l)
        bias = [None] + [layer_refs[l][2][...] for l in range(1, L)]

        h = [jnp.zeros((Bp, hs), f32) for hs in hidden_sizes]
        c = [jnp.zeros((Bp, hs), f32) for hs in hidden_sizes]

        # ---- Wave-pipelined (skewed) recurrence.  Layers are visited
        # high -> low inside a wave so layer l still reads h[l-1] at timestep
        # (w - l) (produced in the previous wave) before layer l-1 overwrites it.
        for w in range(T + L - 1):
            for l in reversed(range(L)):
                s = w - l
                if s < 0 or s >= T:
                    continue
                H = hidden_sizes[l]
                if l == 0:
                    # Tile-aligned (Bp-row) slice of the hoisted projection +
                    # the recurrent matmul (bias already folded into gx0).
                    gates = gx0[s * Bp:(s + 1) * Bp, :] + jnp.dot(
                        h[0].astype(bf16), whh[0], preferred_element_type=f32)
                else:
                    # Cross-layer + recurrent matmuls: both operands were
                    # produced in the previous wave, so the two matmuls are
                    # independent and pipeline back-to-back on the MXU.
                    gates = (
                        jnp.dot(h[l - 1].astype(bf16), wih[l],
                                preferred_element_type=f32)
                        + jnp.dot(h[l].astype(bf16), whh[l],
                                  preferred_element_type=f32)
                        + bias[l])
                h[l], c[l] = lstm_step(gates, c[l], H)

        # ---- FC head on the last layer's final-timestep hidden state.
        logits = jnp.dot(h[L - 1].astype(bf16), fcw_ref[...],
                         preferred_element_type=f32) + fcb_ref[...]
        # Dropout: identity in eval/inference mode.
        # TODO(synk): module defines self.softmax but never applies it in forward.
        o_ref[...] = logits[:B, :].astype(o_ref.dtype)

    return kernel


# ------------------------------- Full forward ---------------------------------
def prepare_kernel_params(params):
    """One-time layout/dtype prep (call OUTSIDE jit): transpose, fuse biases, bf16."""
    kp = {"layers": []}
    for (w_ih, w_hh, b_ih, b_hh) in params["lstm_layers"]:
        H = int(w_hh.shape[1])
        kp["layers"].append((
            jnp.asarray(w_ih.T, jnp.bfloat16),                         # (in_l, 4H)
            jnp.asarray(w_hh.T, jnp.bfloat16),                         # (H, 4H)
            jnp.asarray((b_ih + b_hh).reshape(1, 4 * H), jnp.float32),  # (1, 4H)
        ))
    kp["fc_w"] = jnp.asarray(params["fc_w"].T, jnp.bfloat16)           # (H_last, C)
    kp["fc_b"] = jnp.asarray(params["fc_b"].reshape(1, -1), jnp.float32)
    return kp


def my_network_lstm_forward(emg, kparams):
    """emg: (B, T, I) batch-first like the PyTorch module. Returns (B, C) logits."""
    B, T, input_size = emg.shape
    hidden_sizes = [int(whh_t.shape[0]) for (_, whh_t, _) in kparams["layers"]]
    num_classes = int(kparams["fc_w"].shape[1])

    # Pad batch to a full 8-sublane tile: a (2,x) and an (8,x) operand occupy
    # the same vregs / MXU passes, but all in-kernel per-timestep slices become
    # tile-aligned (no masked sublane extracts). Padded rows are never read back.
    Bp = ((B + 7) // 8) * 8
    x = jnp.transpose(emg, (1, 0, 2)).astype(jnp.bfloat16)              # (T, B, I)
    x = jnp.pad(x, ((0, 0), (0, Bp - B), (0, 0))).reshape(T * Bp, input_size)

    args = [x]
    for layer in kparams["layers"]:
        args.extend(layer)
    args.append(kparams["fc_w"])
    args.append(kparams["fc_b"])

    kernel = _make_fused_lstm_fc_kernel(T, B, Bp, input_size, hidden_sizes,
                                        num_classes)
    # Total residency here is < 0.2 MiB; the explicit limit is only a guard.
    # TODO(synk): for much larger T*B*H, chunk the hoisted gx projection over T
    # and/or add a parallel batch grid axis (v7x has 2 TensorCores).
    return pl.pallas_call(
        kernel,
        out_shape=jax.ShapeDtypeStruct((B, num_classes), jnp.float32),
        compiler_params=pltpu.CompilerParams(vmem_limit_bytes=32 * 1024 * 1024),
    )(*args)


# --------------------------- Pure-JAX reference --------------------------------
def _reference_forward(emg, params, operand_dtype=jnp.float32):
    """Reference forward. `operand_dtype=jnp.bfloat16` rounds matmul operands the
    same way the kernel feeds the MXU, while keeping all math in float32."""
    def rnd(a):
        return a.astype(operand_dtype).astype(jnp.float32)

    x = emg.astype(jnp.float32)
    B = x.shape[0]
    for (w_ih, w_hh, b_ih, b_hh) in params["lstm_layers"]:
        H = w_hh.shape[1]
        wih_t, whh_t = rnd(w_ih.T), rnd(w_hh.T)
        b = (b_ih + b_hh).astype(jnp.float32)
        h = jnp.zeros((B, H), jnp.float32)
        c = jnp.zeros((B, H), jnp.float32)
        outs = []
        for t in range(x.shape[1]):
            gates = rnd(x[:, t, :]) @ wih_t + rnd(h) @ whh_t + b
            i_g = jax.nn.sigmoid(gates[:, 0 * H:1 * H])
            f_g = jax.nn.sigmoid(gates[:, 1 * H:2 * H])
            g_g = jnp.tanh(gates[:, 2 * H:3 * H])
            o_g = jax.nn.sigmoid(gates[:, 3 * H:4 * H])
            c = f_g * c + i_g * g_g
            h = o_g * jnp.tanh(c)
            outs.append(h)
        x = jnp.stack(outs, axis=1)
    return rnd(x[:, -1, :]) @ rnd(params["fc_w"].T) + params["fc_b"]


# --------------------------- Deterministic params ------------------------------
def init_params(key, input_size, hidden_sizes, num_classes):
    params = {"lstm_layers": []}
    in_sz = input_size
    for h in hidden_sizes:
        bound = 1.0 / (h ** 0.5)
        key, k1, k2, k3, k4 = jax.random.split(key, 5)
        w_ih = jax.random.uniform(k1, (4 * h, in_sz), jnp.float32, -bound, bound)
        w_hh = jax.random.uniform(k2, (4 * h, h), jnp.float32, -bound, bound)
        b_ih = jax.random.uniform(k3, (4 * h,), jnp.float32, -bound, bound)
        b_hh = jax.random.uniform(k4, (4 * h,), jnp.float32, -bound, bound)
        params["lstm_layers"].append((w_ih, w_hh, b_ih, b_hh))
        in_sz = h
    bound = 1.0 / (in_sz ** 0.5)
    key, k1, k2 = jax.random.split(key, 3)
    params["fc_w"] = jax.random.uniform(k1, (num_classes, in_sz), jnp.float32, -bound, bound)
    params["fc_b"] = jax.random.uniform(k2, (num_classes,), jnp.float32, -bound, bound)
    return params


if __name__ == "__main__":
    # Module config: input_shape_emg=(seq, features), hidden_sizes, num_classes.
    batch = 2
    seq_len = 8
    feat = 16
    hidden_sizes_emg = [32, 32]
    num_classes = 4
    dropout_rate = 0.5   # eval/inference -> dropout is identity

    key = jax.random.PRNGKey(0)
    key, k_x = jax.random.split(key)
    emg = jax.random.normal(k_x, (batch, seq_len, feat), jnp.float32)
    params = init_params(key, feat, hidden_sizes_emg, num_classes)

    kparams = prepare_kernel_params(params)            # one-time layout/dtype prep
    fwd = jax.jit(functools.partial(my_network_lstm_forward, kparams=kparams))
    out = fwd(emg)
    jax.block_until_ready(out)
    assert out.shape == (batch, num_classes), out.shape

    # Check against a pure-JAX reference whose matmul operands are rounded to
    # bf16 exactly like the kernel's MXU operands (remaining difference is only
    # accumulation order), so the structural/gate-order correctness is strict.
    ref = _reference_forward(emg, params, operand_dtype=jnp.bfloat16)
    max_err = float(jnp.max(jnp.abs(out - ref)))
    assert max_err < 2e-2, max_err

    print("KERNEL_OK")
</pallas_src>

<mosaic_0001>
module attributes {stable_mosaic.version = 11 : i64} {
  func.func @kernel(%arg0: memref<64x16xbf16, #tpu.memory_space<vmem>>, %arg1: memref<16x128xbf16, #tpu.memory_space<vmem>>, %arg2: memref<32x128xbf16, #tpu.memory_space<vmem>>, %arg3: memref<1x128xf32, #tpu.memory_space<vmem>>, %arg4: memref<32x128xbf16, #tpu.memory_space<vmem>>, %arg5: memref<32x128xbf16, #tpu.memory_space<vmem>>, %arg6: memref<1x128xf32, #tpu.memory_space<vmem>>, %arg7: memref<32x4xbf16, #tpu.memory_space<vmem>>, %arg8: memref<1x4xf32, #tpu.memory_space<vmem>>, %arg9: memref<2x4xf32, #tpu.memory_space<vmem>>) attributes {dimension_semantics = [], scalar_prefetch = 0 : i64, scratch_operands = 0 : i64, tpu.core_type = #tpu.core_type<tc>} {
    %c0 = arith.constant 0 : index
    %c0_0 = arith.constant 0 : index
    %0 = vector.load %arg0[%c0, %c0_0] : memref<64x16xbf16, #tpu.memory_space<vmem>>, vector<64x16xbf16>
    %c0_1 = arith.constant 0 : index
    %c0_2 = arith.constant 0 : index
    %1 = vector.load %arg1[%c0_1, %c0_2] : memref<16x128xbf16, #tpu.memory_space<vmem>>, vector<16x128xbf16>
    %cst = arith.constant dense<0.000000e+00> : vector<64x128xf32>
    %2 = tpu.matmul %0, %1, %cst {dimension_numbers = #tpu.dot_dimension_numbers<[1], [0], [0], [1], [0, 0, 1, 1], [], []>} : vector<64x16xbf16>, vector<16x128xbf16>, vector<64x128xf32> -> vector<64x128xf32>
    %c0_3 = arith.constant 0 : index
    %c0_4 = arith.constant 0 : index
    %3 = vector.load %arg3[%c0_3, %c0_4] : memref<1x128xf32, #tpu.memory_space<vmem>>, vector<1x128xf32>
    %4 = vector.broadcast %3 : vector<1x128xf32> to vector<64x128xf32>
    %5 = arith.addf %2, %4 : vector<64x128xf32>
    %c0_5 = arith.constant 0 : index
    %c0_6 = arith.constant 0 : index
    %6 = vector.load %arg2[%c0_5, %c0_6] : memref<32x128xbf16, #tpu.memory_space<vmem>>, vector<32x128xbf16>
    %c0_7 = arith.constant 0 : index
    %c0_8 = arith.constant 0 : index
    %7 = vector.load %arg5[%c0_7, %c0_8] : memref<32x128xbf16, #tpu.memory_space<vmem>>, vector<32x128xbf16>
    %c0_9 = arith.constant 0 : index
    %c0_10 = arith.constant 0 : index
    %8 = vector.load %arg4[%c0_9, %c0_10] : memref<32x128xbf16, #tpu.memory_space<vmem>>, vector<32x128xbf16>
    %c0_11 = arith.constant 0 : index
    %c0_12 = arith.constant 0 : index
    %9 = vector.load %arg6[%c0_11, %c0_12] : memref<1x128xf32, #tpu.memory_space<vmem>>, vector<1x128xf32>
    %cst_13 = arith.constant 0.000000e+00 : f32
    %10 = vector.broadcast %cst_13 : f32 to vector<8x32xf32>
    %cst_14 = arith.constant 0.000000e+00 : f32
    %11 = vector.broadcast %cst_14 : f32 to vector<8x32xf32>
    %cst_15 = arith.constant 0.000000e+00 : f32
    %12 = vector.broadcast %cst_15 : f32 to vector<8x32xf32>
    %cst_16 = arith.constant 0.000000e+00 : f32
    %13 = vector.broadcast %cst_16 : f32 to vector<8x32xf32>
    %14 = vector.extract_strided_slice %5 {offsets = [0, 0], sizes = [8, 128], strides = [1, 1]} : vector<64x128xf32> to vector<8x128xf32>
    %15 = arith.truncf %10 : vector<8x32xf32> to vector<8x32xbf16>
    %cst_17 = arith.constant dense<0.000000e+00> : vector<8x128xf32>
    %16 = tpu.matmul %15, %6, %cst_17 {dimension_numbers = #tpu.dot_dimension_numbers<[1], [0], [0], [1], [0, 0, 1, 1], [], []>} : vector<8x32xbf16>, vector<32x128xbf16>, vector<8x128xf32> -> vector<8x128xf32>
    %17 = arith.addf %14, %16 : vector<8x128xf32>
    %18 = arith.negf %17 : vector<8x128xf32>
    %19 = math.exp %18 : vector<8x128xf32>
    %cst_18 = arith.constant 1.000000e+00 : f32
    %20 = vector.broadcast %cst_18 : f32 to vector<8x128xf32>
    %21 = arith.addf %20, %19 : vector<8x128xf32>
    %22 = arith.divf %20, %21 : vector<8x128xf32>
    %23 = vector.extract_strided_slice %17 {offsets = [0, 64], sizes = [8, 32], strides = [1, 1]} : vector<8x128xf32> to vector<8x32xf32>
    %24 = math.tanh %23 : vector<8x32xf32>
    %25 = vector.extract_strided_slice %22 {offsets = [0, 0], sizes = [8, 32], strides = [1, 1]} : vector<8x128xf32> to vector<8x32xf32>
    %26 = vector.extract_strided_slice %22 {offsets = [0, 32], sizes = [8, 32], strides = [1, 1]} : vector<8x128xf32> to vector<8x32xf32>
    %27 = vector.extract_strided_slice %22 {offsets = [0, 96], sizes = [8, 32], strides = [1, 1]} : vector<8x128xf32> to vector<8x32xf32>
    %28 = arith.mulf %26, %12 : vector<8x32xf32>
    %29 = arith.mulf %25, %24 : vector<8x32xf32>
    %30 = arith.addf %28, %29 : vector<8x32xf32>
    %31 = math.tanh %30 : vector<8x32xf32>
    %32 = arith.mulf %27, %31 : vector<8x32xf32>
    %33 = arith.truncf %32 : vector<8x32xf32> to vector<8x32xbf16>
    %cst_19 = arith.constant dense<0.000000e+00> : vector<8x128xf32>
    %34 = tpu.matmul %33, %8, %cst_19 {dimension_numbers = #tpu.dot_dimension_numbers<[1], [0], [0], [1], [0, 0, 1, 1], [], []>} : vector<8x32xbf16>, vector<32x128xbf16>, vector<8x128xf32> -> vector<8x128xf32>
    %35 = arith.truncf %11 : vector<8x32xf32> to vector<8x32xbf16>
    %cst_20 = arith.constant dense<0.000000e+00> : vector<8x128xf32>
    %36 = tpu.matmul %35, %7, %cst_20 {dimension_numbers = #tpu.dot_dimension_numbers<[1], [0], [0], [1], [0, 0, 1, 1], [], []>} : vector<8x32xbf16>, vector<32x128xbf16>, vector<8x128xf32> -> vector<8x128xf32>
    %37 = arith.addf %34, %36 : vector<8x128xf32>
    %38 = vector.broadcast %9 : vector<1x128xf32> to vector<8x128xf32>
    %39 = arith.addf %37, %38 : vector<8x128xf32>
    %40 = arith.negf %39 : vector<8x128xf32>
    %41 = math.exp %40 : vector<8x128xf32>
    %cst_21 = arith.constant 1.000000e+00 : f32
    %42 = vector.broadcast %cst_21 : f32 to vector<8x128xf32>
    %43 = arith.addf %42, %41 : vector<8x128xf32>
    %44 = arith.divf %42, %43 : vector<8x128xf32>
    %45 = vector.extract_strided_slice %39 {offsets = [0, 64], sizes = [8, 32], strides = [1, 1]} : vector<8x128xf32> to vector<8x32xf32>
    %46 = math.tanh %45 : vector<8x32xf32>
    %47 = vector.extract_strided_slice %44 {offsets = [0, 0], sizes = [8, 32], strides = [1, 1]} : vector<8x128xf32> to vector<8x32xf32>
    %48 = vector.extract_strided_slice %44 {offsets = [0, 32], sizes = [8, 32], strides = [1, 1]} : vector<8x128xf32> to vector<8x32xf32>
    %49 = vector.extract_strided_slice %44 {offsets = [0, 96], sizes = [8, 32], strides = [1, 1]} : vector<8x128xf32> to vector<8x32xf32>
    %50 = arith.mulf %48, %13 : vector<8x32xf32>
    %51 = arith.mulf %47, %46 : vector<8x32xf32>
    %52 = arith.addf %50, %51 : vector<8x32xf32>
    %53 = math.tanh %52 : vector<8x32xf32>
    %54 = arith.mulf %49, %53 : vector<8x32xf32>
    %55 = vector.extract_strided_slice %5 {offsets = [8, 0], sizes = [8, 128], strides = [1, 1]} : vector<64x128xf32> to vector<8x128xf32>
    %56 = arith.truncf %32 : vector<8x32xf32> to vector<8x32xbf16>
    %cst_22 = arith.constant dense<0.000000e+00> : vector<8x128xf32>
    %57 = tpu.matmul %56, %6, %cst_22 {dimension_numbers = #tpu.dot_dimension_numbers<[1], [0], [0], [1], [0, 0, 1, 1], [], []>} : vector<8x32xbf16>, vector<32x128xbf16>, vector<8x128xf32> -> vector<8x128xf32>
    %58 = arith.addf %55, %57 : vector<8x128xf32>
    %59 = arith.negf %58 : vector<8x128xf32>
    %60 = math.exp %59 : vector<8x128xf32>
    %cst_23 = arith.constant 1.000000e+00 : f32
    %61 = vector.broadcast %cst_23 : f32 to vector<8x128xf32>
    %62 = arith.addf %61, %60 : vector<8x128xf32>
    %63 = arith.divf %61, %62 : vector<8x128xf32>
    %64 = vector.extract_strided_slice %58 {offsets = [0, 64], sizes = [8, 32], strides = [1, 1]} : vector<8x128xf32> to vector<8x32xf32>
    %65 = math.tanh %64 : vector<8x32xf32>
    %66 = vector.extract_strided_slice %63 {offsets = [0, 0], sizes = [8, 32], strides = [1, 1]} : vector<8x128xf32> to vector<8x32xf32>
    %67 = vector.extract_strided_slice %63 {offsets = [0, 32], sizes = [8, 32], strides = [1, 1]} : vector<8x128xf32> to vector<8x32xf32>
    %68 = vector.extract_strided_slice %63 {offsets = [0, 96], sizes = [8, 32], strides = [1, 1]} : vector<8x128xf32> to vector<8x32xf32>
    %69 = arith.mulf %67, %30 : vector<8x32xf32>
    %70 = arith.mulf %66, %65 : vector<8x32xf32>
    %71 = arith.addf %69, %70 : vector<8x32xf32>
    %72 = math.tanh %71 : vector<8x32xf32>
    %73 = arith.mulf %68, %72 : vector<8x32xf32>
    %74 = arith.truncf %73 : vector<8x32xf32> to vector<8x32xbf16>
    %cst_24 = arith.constant dense<0.000000e+00> : vector<8x128xf32>
    %75 = tpu.matmul %74, %8, %cst_24 {dimension_numbers = #tpu.dot_dimension_numbers<[1], [0], [0], [1], [0, 0, 1, 1], [], []>} : vector<8x32xbf16>, vector<32x128xbf16>, vector<8x128xf32> -> vector<8x128xf32>
    %76 = arith.truncf %54 : vector<8x32xf32> to vector<8x32xbf16>
    %cst_25 = arith.constant dense<0.000000e+00> : vector<8x128xf32>
    %77 = tpu.matmul %76, %7, %cst_25 {dimension_numbers = #tpu.dot_dimension_numbers<[1], [0], [0], [1], [0, 0, 1, 1], [], []>} : vector<8x32xbf16>, vector<32x128xbf16>, vector<8x128xf32> -> vector<8x128xf32>
    %78 = arith.addf %75, %77 : vector<8x128xf32>
    %79 = vector.broadcast %9 : vector<1x128xf32> to vector<8x128xf32>
    %80 = arith.addf %78, %79 : vector<8x128xf32>
    %81 = arith.negf %80 : vector<8x128xf32>
    %82 = math.exp %81 : vector<8x128xf32>
    %cst_26 = arith.constant 1.000000e+00 : f32
    %83 = vector.broadcast %cst_26 : f32 to vector<8x128xf32>
    %84 = arith.addf %83, %82 : vector<8x128xf32>
    %85 = arith.divf %83, %84 : vector<8x128xf32>
    %86 = vector.extract_strided_slice %80 {offsets = [0, 64], sizes = [8, 32], strides = [1, 1]} : vector<8x128xf32> to vector<8x32xf32>
    %87 = math.tanh %86 : vector<8x32xf32>
    %88 = vector.extract_strided_slice %85 {offsets = [0, 0], sizes = [8, 32], strides = [1, 1]} : vector<8x128xf32> to vector<8x32xf32>
    %89 = vector.extract_strided_slice %85 {offsets = [0, 32], sizes = [8, 32], strides = [1, 1]} : vector<8x128xf32> to vector<8x32xf32>
    %90 = vector.extract_strided_slice %85 {offsets = [0, 96], sizes = [8, 32], strides = [1, 1]} : vector<8x128xf32> to vector<8x32xf32>
    %91 = arith.mulf %89, %52 : vector<8x32xf32>
    %92 = arith.mulf %88, %87 : vector<8x32xf32>
    %93 = arith.addf %91, %92 : vector<8x32xf32>
    %94 = math.tanh %93 : vector<8x32xf32>
    %95 = arith.mulf %90, %94 : vector<8x32xf32>
    %96 = vector.extract_strided_slice %5 {offsets = [16, 0], sizes = [8, 128], strides = [1, 1]} : vector<64x128xf32> to vector<8x128xf32>
    %97 = arith.truncf %73 : vector<8x32xf32> to vector<8x32xbf16>
    %cst_27 = arith.constant dense<0.000000e+00> : vector<8x128xf32>
    %98 = tpu.matmul %97, %6, %cst_27 {dimension_numbers = #tpu.dot_dimension_numbers<[1], [0], [0], [1], [0, 0, 1, 1], [], []>} : vector<8x32xbf16>, vector<32x128xbf16>, vector<8x128xf32> -> vector<8x128xf32>
    %99 = arith.addf %96, %98 : vector<8x128xf32>
    %100 = arith.negf %99 : vector<8x128xf32>
    %101 = math.exp %100 : vector<8x128xf32>
    %cst_28 = arith.constant 1.000000e+00 : f32
    %102 = vector.broadcast %cst_28 : f32 to vector<8x128xf32>
    %103 = arith.addf %102, %101 : vector<8x128xf32>
    %104 = arith.divf %102, %103 : vector<8x128xf32>
    %105 = vector.extract_strided_slice %99 {offsets = [0, 64], sizes = [8, 32], strides = [1, 1]} : vector<8x128xf32> to vector<8x32xf32>
    %106 = math.tanh %105 : vector<8x32xf32>
    %107 = vector.extract_strided_slice %104 {offsets = [0, 0], sizes = [8, 32], strides = [1, 1]} : vector<8x128xf32> to vector<8x32xf32>
    %108 = vector.extract_strided_slice %104 {offsets = [0, 32], sizes = [8, 32], strides = [1, 1]} : vector<8x128xf32> to vector<8x32xf32>
    %109 = vector.extract_strided_slice %104 {offsets = [0, 96], sizes = [8, 32], strides = [1, 1]} : vector<8x128xf32> to vector<8x32xf32>
    %110 = arith.mulf %108, %71 : vector<8x32xf32>
    %111 = arith.mulf %107, %106 : vector<8x32xf32>
    %112 = arith.addf %110, %111 : vector<8x32xf32>
    %113 = math.tanh %112 : vector<8x32xf32>
    %114 = arith.mulf %109, %113 : vector<8x32xf32>
    %115 = arith.truncf %114 : vector<8x32xf32> to vector<8x32xbf16>
    %cst_29 = arith.constant dense<0.000000e+00> : vector<8x128xf32>
    %116 = tpu.matmul %115, %8, %cst_29 {dimension_numbers = #tpu.dot_dimension_numbers<[1], [0], [0], [1], [0, 0, 1, 1], [], []>} : vector<8x32xbf16>, vector<32x128xbf16>, vector<8x128xf32> -> vector<8x128xf32>
    %117 = arith.truncf %95 : vector<8x32xf32> to vector<8x32xbf16>
    %cst_30 = arith.constant dense<0.000000e+00> : vector<8x128xf32>
    %118 = tpu.matmul %117, %7, %cst_30 {dimension_numbers = #tpu.dot_dimension_numbers<[1], [0], [0], [1], [0, 0, 1, 1], [], []>} : vector<8x32xbf16>, vector<32x128xbf16>, vector<8x128xf32> -> vector<8x128xf32>
    %119 = arith.addf %116, %118 : vector<8x128xf32>
    %120 = vector.broadcast %9 : vector<1x128xf32> to vector<8x128xf32>
    %121 = arith.addf %119, %120 : vector<8x128xf32>
    %122 = arith.negf %121 : vector<8x128xf32>
    %123 = math.exp %122 : vector<8x128xf32>
    %cst_31 = arith.constant 1.000000e+00 : f32
    %124 = vector.broadcast %cst_31 : f32 to vector<8x128xf32>
    %125 = arith.addf %124, %123 : vector<8x128xf32>
    %126 = arith.divf %124, %125 : vector<8x128xf32>
    %127 = vector.extract_strided_slice %121 {offsets = [0, 64], sizes = [8, 32], strides = [1, 1]} : vector<8x128xf32> to vector<8x32xf32>
    %128 = math.tanh %127 : vector<8x32xf32>
    %129 = vector.extract_strided_slice %126 {offsets = [0, 0], sizes = [8, 32], strides = [1, 1]} : vector<8x128xf32> to vector<8x32xf32>
    %130 = vector.extract_strided_slice %126 {offsets = [0, 32], sizes = [8, 32], strides = [1, 1]} : vector<8x128xf32> to vector<8x32xf32>
    %131 = vector.extract_strided_slice %126 {offsets = [0, 96], sizes = [8, 32], strides = [1, 1]} : vector<8x128xf32> to vector<8x32xf32>
    %132 = arith.mulf %130, %93 : vector<8x32xf32>
    %133 = arith.mulf %129, %128 : vector<8x32xf32>
    %134 = arith.addf %132, %133 : vector<8x32xf32>
    %135 = math.tanh %134 : vector<8x32xf32>
    %136 = arith.mulf %131, %135 : vector<8x32xf32>
    %137 = vector.extract_strided_slice %5 {offsets = [24, 0], sizes = [8, 128], strides = [1, 1]} : vector<64x128xf32> to vector<8x128xf32>
    %138 = arith.truncf %114 : vector<8x32xf32> to vector<8x32xbf16>
    %cst_32 = arith.constant dense<0.000000e+00> : vector<8x128xf32>
    %139 = tpu.matmul %138, %6, %cst_32 {dimension_numbers = #tpu.dot_dimension_numbers<[1], [0], [0], [1], [0, 0, 1, 1], [], []>} : vector<8x32xbf16>, vector<32x128xbf16>, vector<8x128xf32> -> vector<8x128xf32>
    %140 = arith.addf %137, %139 : vector<8x128xf32>
    %141 = arith.negf %140 : vector<8x128xf32>
    %142 = math.exp %141 : vector<8x128xf32>
    %cst_33 = arith.constant 1.000000e+00 : f32
    %143 = vector.broadcast %cst_33 : f32 to vector<8x128xf32>
    %144 = arith.addf %143, %142 : vector<8x128xf32>
    %145 = arith.divf %143, %144 : vector<8x128xf32>
    %146 = vector.extract_strided_slice %140 {offsets = [0, 64], sizes = [8, 32], strides = [1, 1]} : vector<8x128xf32> to vector<8x32xf32>
    %147 = math.tanh %146 : vector<8x32xf32>
    %148 = vector.extract_strided_slice %145 {offsets = [0, 0], sizes = [8, 32], strides = [1, 1]} : vector<8x128xf32> to vector<8x32xf32>
    %149 = vector.extract_strided_slice %145 {offsets = [0, 32], sizes = [8, 32], strides = [1, 1]} : vector<8x128xf32> to vector<8x32xf32>
    %150 = vector.extract_strided_slice %145 {offsets = [0, 96], sizes = [8, 32], strides = [1, 1]} : vector<8x128xf32> to vector<8x32xf32>
    %151 = arith.mulf %149, %112 : vector<8x32xf32>
    %152 = arith.mulf %148, %147 : vector<8x32xf32>
    %153 = arith.addf %151, %152 : vector<8x32xf32>
    %154 = math.tanh %153 : vector<8x32xf32>
    %155 = arith.mulf %150, %154 : vector<8x32xf32>
    %156 = arith.truncf %155 : vector<8x32xf32> to vector<8x32xbf16>
    %cst_34 = arith.constant dense<0.000000e+00> : vector<8x128xf32>
    %157 = tpu.matmul %156, %8, %cst_34 {dimension_numbers = #tpu.dot_dimension_numbers<[1], [0], [0], [1], [0, 0, 1, 1], [], []>} : vector<8x32xbf16>, vector<32x128xbf16>, vector<8x128xf32> -> vector<8x128xf32>
    %158 = arith.truncf %136 : vector<8x32xf32> to vector<8x32xbf16>
    %cst_35 = arith.constant dense<0.000000e+00> : vector<8x128xf32>
    %159 = tpu.matmul %158, %7, %cst_35 {dimension_numbers = #tpu.dot_dimension_numbers<[1], [0], [0], [1], [0, 0, 1, 1], [], []>} : vector<8x32xbf16>, vector<32x128xbf16>, vector<8x128xf32> -> vector<8x128xf32>
    %160 = arith.addf %157, %159 : vector<8x128xf32>
    %161 = vector.broadcast %9 : vector<1x128xf32> to vector<8x128xf32>
    %162 = arith.addf %160, %161 : vector<8x128xf32>
    %163 = arith.negf %162 : vector<8x128xf32>
    %164 = math.exp %163 : vector<8x128xf32>
    %cst_36 = arith.constant 1.000000e+00 : f32
    %165 = vector.broadcast %cst_36 : f32 to vector<8x128xf32>
    %166 = arith.addf %165, %164 : vector<8x128xf32>
    %167 = arith.divf %165, %166 : vector<8x128xf32>
    %168 = vector.extract_strided_slice %162 {offsets = [0, 64], sizes = [8, 32], strides = [1, 1]} : vector<8x128xf32> to vector<8x32xf32>
    %169 = math.tanh %168 : vector<8x32xf32>
    %170 = vector.extract_strided_slice %167 {offsets = [0, 0], sizes = [8, 32], strides = [1, 1]} : vector<8x128xf32> to vector<8x32xf32>
    %171 = vector.extract_strided_slice %167 {offsets = [0, 32], sizes = [8, 32], strides = [1, 1]} : vector<8x128xf32> to vector<8x32xf32>
    %172 = vector.extract_strided_slice %167 {offsets = [0, 96], sizes = [8, 32], strides = [1, 1]} : vector<8x128xf32> to vector<8x32xf32>
    %173 = arith.mulf %171, %134 : vector<8x32xf32>
    %174 = arith.mulf %170, %169 : vector<8x32xf32>
    %175 = arith.addf %173, %174 : vector<8x32xf32>
    %176 = math.tanh %175 : vector<8x32xf32>
    %177 = arith.mulf %172, %176 : vector<8x32xf32>
    %178 = vector.extract_strided_slice %5 {offsets = [32, 0], sizes = [8, 128], strides = [1, 1]} : vector<64x128xf32> to vector<8x128xf32>
    %179 = arith.truncf %155 : vector<8x32xf32> to vector<8x32xbf16>
    %cst_37 = arith.constant dense<0.000000e+00> : vector<8x128xf32>
    %180 = tpu.matmul %179, %6, %cst_37 {dimension_numbers = #tpu.dot_dimension_numbers<[1], [0], [0], [1], [0, 0, 1, 1], [], []>} : vector<8x32xbf16>, vector<32x128xbf16>, vector<8x128xf32> -> vector<8x128xf32>
    %181 = arith.addf %178, %180 : vector<8x128xf32>
    %182 = arith.negf %181 : vector<8x128xf32>
    %183 = math.exp %182 : vector<8x128xf32>
    %cst_38 = arith.constant 1.000000e+00 : f32
    %184 = vector.broadcast %cst_38 : f32 to vector<8x128xf32>
    %185 = arith.addf %184, %183 : vector<8x128xf32>
    %186 = arith.divf %184, %185 : vector<8x128xf32>
    %187 = vector.extract_strided_slice %181 {offsets = [0, 64], sizes = [8, 32], strides = [1, 1]} : vector<8x128xf32> to vector<8x32xf32>
    %188 = math.tanh %187 : vector<8x32xf32>
    %189 = vector.extract_strided_slice %186 {offsets = [0, 0], sizes = [8, 32], strides = [1, 1]} : vector<8x128xf32> to vector<8x32xf32>
    %190 = vector.extract_strided_slice %186 {offsets = [0, 32], sizes = [8, 32], strides = [1, 1]} : vector<8x128xf32> to vector<8x32xf32>
    %191 = vector.extract_strided_slice %186 {offsets = [0, 96], sizes = [8, 32], strides = [1, 1]} : vector<8x128xf32> to vector<8x32xf32>
    %192 = arith.mulf %190, %153 : vector<8x32xf32>
    %193 = arith.mulf %189, %188 : vector<8x32xf32>
    %194 = arith.addf %192, %193 : vector<8x32xf32>
    %195 = math.tanh %194 : vector<8x32xf32>
    %196 = arith.mulf %191, %195 : vector<8x32xf32>
    %197 = arith.truncf %196 : vector<8x32xf32> to vector<8x32xbf16>
    %cst_39 = arith.constant dense<0.000000e+00> : vector<8x128xf32>
    %198 = tpu.matmul %197, %8, %cst_39 {dimension_numbers = #tpu.dot_dimension_numbers<[1], [0], [0], [1], [0, 0, 1, 1], [], []>} : vector<8x32xbf16>, vector<32x128xbf16>, vector<8x128xf32> -> vector<8x128xf32>
    %199 = arith.truncf %177 : vector<8x32xf32> to vector<8x32xbf16>
    %cst_40 = arith.constant dense<0.000000e+00> : vector<8x128xf32>
    %200 = tpu.matmul %199, %7, %cst_40 {dimension_numbers = #tpu.dot_dimension_numbers<[1], [0], [0], [1], [0, 0, 1, 1], [], []>} : vector<8x32xbf16>, vector<32x128xbf16>, vector<8x128xf32> -> vector<8x128xf32>
    %201 = arith.addf %198, %200 : vector<8x128xf32>
    %202 = vector.broadcast %9 : vector<1x128xf32> to vector<8x128xf32>
    %203 = arith.addf %201, %202 : vector<8x128xf32>
    %204 = arith.negf %203 : vector<8x128xf32>
    %205 = math.exp %204 : vector<8x128xf32>
    %cst_41 = arith.constant 1.000000e+00 : f32
    %206 = vector.broadcast %cst_41 : f32 to vector<8x128xf32>
    %207 = arith.addf %206, %205 : vector<8x128xf32>
    %208 = arith.divf %206, %207 : vector<8x128xf32>
    %209 = vector.extract_strided_slice %203 {offsets = [0, 64], sizes = [8, 32], strides = [1, 1]} : vector<8x128xf32> to vector<8x32xf32>
    %210 = math.tanh %209 : vector<8x32xf32>
    %211 = vector.extract_strided_slice %208 {offsets = [0, 0], sizes = [8, 32], strides = [1, 1]} : vector<8x128xf32> to vector<8x32xf32>
    %212 = vector.extract_strided_slice %208 {offsets = [0, 32], sizes = [8, 32], strides = [1, 1]} : vector<8x128xf32> to vector<8x32xf32>
    %213 = vector.extract_strided_slice %208 {offsets = [0, 96], sizes = [8, 32], strides = [1, 1]} : vector<8x128xf32> to vector<8x32xf32>
    %214 = arith.mulf %212, %175 : vector<8x32xf32>
    %215 = arith.mulf %211, %210 : vector<8x32xf32>
    %216 = arith.addf %214, %215 : vector<8x32xf32>
    %217 = math.tanh %216 : vector<8x32xf32>
    %218 = arith.mulf %213, %217 : vector<8x32xf32>
    %219 = vector.extract_strided_slice %5 {offsets = [40, 0], sizes = [8, 128], strides = [1, 1]} : vector<64x128xf32> to vector<8x128xf32>
    %220 = arith.truncf %196 : vector<8x32xf32> to vector<8x32xbf16>
    %cst_42 = arith.constant dense<0.000000e+00> : vector<8x128xf32>
    %221 = tpu.matmul %220, %6, %cst_42 {dimension_numbers = #tpu.dot_dimension_numbers<[1], [0], [0], [1], [0, 0, 1, 1], [], []>} : vector<8x32xbf16>, vector<32x128xbf16>, vector<8x128xf32> -> vector<8x128xf32>
    %222 = arith.addf %219, %221 : vector<8x128xf32>
    %223 = arith.negf %222 : vector<8x128xf32>
    %224 = math.exp %223 : vector<8x128xf32>
    %cst_43 = arith.constant 1.000000e+00 : f32
    %225 = vector.broadcast %cst_43 : f32 to vector<8x128xf32>
    %226 = arith.addf %225, %224 : vector<8x128xf32>
    %227 = arith.divf %225, %226 : vector<8x128xf32>
    %228 = vector.extract_strided_slice %222 {offsets = [0, 64], sizes = [8, 32], strides = [1, 1]} : vector<8x128xf32> to vector<8x32xf32>
    %229 = math.tanh %228 : vector<8x32xf32>
    %230 = vector.extract_strided_slice %227 {offsets = [0, 0], sizes = [8, 32], strides = [1, 1]} : vector<8x128xf32> to vector<8x32xf32>
    %231 = vector.extract_strided_slice %227 {offsets = [0, 32], sizes = [8, 32], strides = [1, 1]} : vector<8x128xf32> to vector<8x32xf32>
    %232 = vector.extract_strided_slice %227 {offsets = [0, 96], sizes = [8, 32], strides = [1, 1]} : vector<8x128xf32> to vector<8x32xf32>
    %233 = arith.mulf %231, %194 : vector<8x32xf32>
    %234 = arith.mulf %230, %229 : vector<8x32xf32>
    %235 = arith.addf %233, %234 : vector<8x32xf32>
    %236 = math.tanh %235 : vector<8x32xf32>
    %237 = arith.mulf %232, %236 : vector<8x32xf32>
    %238 = arith.truncf %237 : vector<8x32xf32> to vector<8x32xbf16>
    %cst_44 = arith.constant dense<0.000000e+00> : vector<8x128xf32>
    %239 = tpu.matmul %238, %8, %cst_44 {dimension_numbers = #tpu.dot_dimension_numbers<[1], [0], [0], [1], [0, 0, 1, 1], [], []>} : vector<8x32xbf16>, vector<32x128xbf16>, vector<8x128xf32> -> vector<8x128xf32>
    %240 = arith.truncf %218 : vector<8x32xf32> to vector<8x32xbf16>
    %cst_45 = arith.constant dense<0.000000e+00> : vector<8x128xf32>
    %241 = tpu.matmul %240, %7, %cst_45 {dimension_numbers = #tpu.dot_dimension_numbers<[1], [0], [0], [1], [0, 0, 1, 1], [], []>} : vector<8x32xbf16>, vector<32x128xbf16>, vector<8x128xf32> -> vector<8x128xf32>
    %242 = arith.addf %239, %241 : vector<8x128xf32>
    %243 = vector.broadcast %9 : vector<1x128xf32> to vector<8x128xf32>
    %244 = arith.addf %242, %243 : vector<8x128xf32>
    %245 = arith.negf %244 : vector<8x128xf32>
    %246 = math.exp %245 : vector<8x128xf32>
    %cst_46 = arith.constant 1.000000e+00 : f32
    %247 = vector.broadcast %cst_46 : f32 to vector<8x128xf32>
    %248 = arith.addf %247, %246 : vector<8x128xf32>
    %249 = arith.divf %247, %248 : vector<8x128xf32>
    %250 = vector.extract_strided_slice %244 {offsets = [0, 64], sizes = [8, 32], strides = [1, 1]} : vector<8x128xf32> to vector<8x32xf32>
    %251 = math.tanh %250 : vector<8x32xf32>
    %252 = vector.extract_strided_slice %249 {offsets = [0, 0], sizes = [8, 32], strides = [1, 1]} : vector<8x128xf32> to vector<8x32xf32>
    %253 = vector.extract_strided_slice %249 {offsets = [0, 32], sizes = [8, 32], strides = [1, 1]} : vector<8x128xf32> to vector<8x32xf32>
    %254 = vector.extract_strided_slice %249 {offsets = [0, 96], sizes = [8, 32], strides = [1, 1]} : vector<8x128xf32> to vector<8x32xf32>
    %255 = arith.mulf %253, %216 : vector<8x32xf32>
    %256 = arith.mulf %252, %251 : vector<8x32xf32>
    %257 = arith.addf %255, %256 : vector<8x32xf32>
    %258 = math.tanh %257 : vector<8x32xf32>
    %259 = arith.mulf %254, %258 : vector<8x32xf32>
    %260 = vector.extract_strided_slice %5 {offsets = [48, 0], sizes = [8, 128], strides = [1, 1]} : vector<64x128xf32> to vector<8x128xf32>
    %261 = arith.truncf %237 : vector<8x32xf32> to vector<8x32xbf16>
    %cst_47 = arith.constant dense<0.000000e+00> : vector<8x128xf32>
    %262 = tpu.matmul %261, %6, %cst_47 {dimension_numbers = #tpu.dot_dimension_numbers<[1], [0], [0], [1], [0, 0, 1, 1], [], []>} : vector<8x32xbf16>, vector<32x128xbf16>, vector<8x128xf32> -> vector<8x128xf32>
    %263 = arith.addf %260, %262 : vector<8x128xf32>
    %264 = arith.negf %263 : vector<8x128xf32>
    %265 = math.exp %264 : vector<8x128xf32>
    %cst_48 = arith.constant 1.000000e+00 : f32
    %266 = vector.broadcast %cst_48 : f32 to vector<8x128xf32>
    %267 = arith.addf %266, %265 : vector<8x128xf32>
    %268 = arith.divf %266, %267 : vector<8x128xf32>
    %269 = vector.extract_strided_slice %263 {offsets = [0, 64], sizes = [8, 32], strides = [1, 1]} : vector<8x128xf32> to vector<8x32xf32>
    %270 = math.tanh %269 : vector<8x32xf32>
    %271 = vector.extract_strided_slice %268 {offsets = [0, 0], sizes = [8, 32], strides = [1, 1]} : vector<8x128xf32> to vector<8x32xf32>
    %272 = vector.extract_strided_slice %268 {offsets = [0, 32], sizes = [8, 32], strides = [1, 1]} : vector<8x128xf32> to vector<8x32xf32>
    %273 = vector.extract_strided_slice %268 {offsets = [0, 96], sizes = [8, 32], strides = [1, 1]} : vector<8x128xf32> to vector<8x32xf32>
    %274 = arith.mulf %272, %235 : vector<8x32xf32>
    %275 = arith.mulf %271, %270 : vector<8x32xf32>
    %276 = arith.addf %274, %275 : vector<8x32xf32>
    %277 = math.tanh %276 : vector<8x32xf32>
    %278 = arith.mulf %273, %277 : vector<8x32xf32>
    %279 = arith.truncf %278 : vector<8x32xf32> to vector<8x32xbf16>
    %cst_49 = arith.constant dense<0.000000e+00> : vector<8x128xf32>
    %280 = tpu.matmul %279, %8, %cst_49 {dimension_numbers = #tpu.dot_dimension_numbers<[1], [0], [0], [1], [0, 0, 1, 1], [], []>} : vector<8x32xbf16>, vector<32x128xbf16>, vector<8x128xf32> -> vector<8x128xf32>
    %281 = arith.truncf %259 : vector<8x32xf32> to vector<8x32xbf16>
    %cst_50 = arith.constant dense<0.000000e+00> : vector<8x128xf32>
    %282 = tpu.matmul %281, %7, %cst_50 {dimension_numbers = #tpu.dot_dimension_numbers<[1], [0], [0], [1], [0, 0, 1, 1], [], []>} : vector<8x32xbf16>, vector<32x128xbf16>, vector<8x128xf32> -> vector<8x128xf32>
    %283 = arith.addf %280, %282 : vector<8x128xf32>
    %284 = vector.broadcast %9 : vector<1x128xf32> to vector<8x128xf32>
    %285 = arith.addf %283, %284 : vector<8x128xf32>
    %286 = arith.negf %285 : vector<8x128xf32>
    %287 = math.exp %286 : vector<8x128xf32>
    %cst_51 = arith.constant 1.000000e+00 : f32
    %288 = vector.broadcast %cst_51 : f32 to vector<8x128xf32>
    %289 = arith.addf %288, %287 : vector<8x128xf32>
    %290 = arith.divf %288, %289 : vector<8x128xf32>
    %291 = vector.extract_strided_slice %285 {offsets = [0, 64], sizes = [8, 32], strides = [1, 1]} : vector<8x128xf32> to vector<8x32xf32>
    %292 = math.tanh %291 : vector<8x32xf32>
    %293 = vector.extract_strided_slice %290 {offsets = [0, 0], sizes = [8, 32], strides = [1, 1]} : vector<8x128xf32> to vector<8x32xf32>
    %294 = vector.extract_strided_slice %290 {offsets = [0, 32], sizes = [8, 32], strides = [1, 1]} : vector<8x128xf32> to vector<8x32xf32>
    %295 = vector.extract_strided_slice %290 {offsets = [0, 96], sizes = [8, 32], strides = [1, 1]} : vector<8x128xf32> to vector<8x32xf32>
    %296 = arith.mulf %294, %257 : vector<8x32xf32>
    %297 = arith.mulf %293, %292 : vector<8x32xf32>
    %298 = arith.addf %296, %297 : vector<8x32xf32>
    %299 = math.tanh %298 : vector<8x32xf32>
    %300 = arith.mulf %295, %299 : vector<8x32xf32>
    %301 = vector.extract_strided_slice %5 {offsets = [56, 0], sizes = [8, 128], strides = [1, 1]} : vector<64x128xf32> to vector<8x128xf32>
    %302 = arith.truncf %278 : vector<8x32xf32> to vector<8x32xbf16>
    %cst_52 = arith.constant dense<0.000000e+00> : vector<8x128xf32>
    %303 = tpu.matmul %302, %6, %cst_52 {dimension_numbers = #tpu.dot_dimension_numbers<[1], [0], [0], [1], [0, 0, 1, 1], [], []>} : vector<8x32xbf16>, vector<32x128xbf16>, vector<8x128xf32> -> vector<8x128xf32>
    %304 = arith.addf %301, %303 : vector<8x128xf32>
    %305 = arith.negf %304 : vector<8x128xf32>
    %306 = math.exp %305 : vector<8x128xf32>
    %cst_53 = arith.constant 1.000000e+00 : f32
    %307 = vector.broadcast %cst_53 : f32 to vector<8x128xf32>
    %308 = arith.addf %307, %306 : vector<8x128xf32>
    %309 = arith.divf %307, %308 : vector<8x128xf32>
    %310 = vector.extract_strided_slice %304 {offsets = [0, 64], sizes = [8, 32], strides = [1, 1]} : vector<8x128xf32> to vector<8x32xf32>
    %311 = math.tanh %310 : vector<8x32xf32>
    %312 = vector.extract_strided_slice %309 {offsets = [0, 0], sizes = [8, 32], strides = [1, 1]} : vector<8x128xf32> to vector<8x32xf32>
    %313 = vector.extract_strided_slice %309 {offsets = [0, 32], sizes = [8, 32], strides = [1, 1]} : vector<8x128xf32> to vector<8x32xf32>
    %314 = vector.extract_strided_slice %309 {offsets = [0, 96], sizes = [8, 32], strides = [1, 1]} : vector<8x128xf32> to vector<8x32xf32>
    %315 = arith.mulf %313, %276 : vector<8x32xf32>
    %316 = arith.mulf %312, %311 : vector<8x32xf32>
    %317 = arith.addf %315, %316 : vector<8x32xf32>
    %318 = math.tanh %317 : vector<8x32xf32>
    %319 = arith.mulf %314, %318 : vector<8x32xf32>
    %320 = arith.truncf %319 : vector<8x32xf32> to vector<8x32xbf16>
    %cst_54 = arith.constant dense<0.000000e+00> : vector<8x128xf32>
    %321 = tpu.matmul %320, %8, %cst_54 {dimension_numbers = #tpu.dot_dimension_numbers<[1], [0], [0], [1], [0, 0, 1, 1], [], []>} : vector<8x32xbf16>, vector<32x128xbf16>, vector<8x128xf32> -> vector<8x128xf32>
    %322 = arith.truncf %300 : vector<8x32xf32> to vector<8x32xbf16>
    %cst_55 = arith.constant dense<0.000000e+00> : vector<8x128xf32>
    %323 = tpu.matmul %322, %7, %cst_55 {dimension_numbers = #tpu.dot_dimension_numbers<[1], [0], [0], [1], [0, 0, 1, 1], [], []>} : vector<8x32xbf16>, vector<32x128xbf16>, vector<8x128xf32> -> vector<8x128xf32>
    %324 = arith.addf %321, %323 : vector<8x128xf32>
    %325 = vector.broadcast %9 : vector<1x128xf32> to vector<8x128xf32>
    %326 = arith.addf %324, %325 : vector<8x128xf32>
    %327 = arith.negf %326 : vector<8x128xf32>
    %328 = math.exp %327 : vector<8x128xf32>
    %cst_56 = arith.constant 1.000000e+00 : f32
    %329 = vector.broadcast %cst_56 : f32 to vector<8x128xf32>
    %330 = arith.addf %329, %328 : vector<8x128xf32>
    %331 = arith.divf %329, %330 : vector<8x128xf32>
    %332 = vector.extract_strided_slice %326 {offsets = [0, 64], sizes = [8, 32], strides = [1, 1]} : vector<8x128xf32> to vector<8x32xf32>
    %333 = math.tanh %332 : vector<8x32xf32>
    %334 = vector.extract_strided_slice %331 {offsets = [0, 0], sizes = [8, 32], strides = [1, 1]} : vector<8x128xf32> to vector<8x32xf32>
    %335 = vector.extract_strided_slice %331 {offsets = [0, 32], sizes = [8, 32], strides = [1, 1]} : vector<8x128xf32> to vector<8x32xf32>
    %336 = vector.extract_strided_slice %331 {offsets = [0, 96], sizes = [8, 32], strides = [1, 1]} : vector<8x128xf32> to vector<8x32xf32>
    %337 = arith.mulf %335, %298 : vector<8x32xf32>
    %338 = arith.mulf %334, %333 : vector<8x32xf32>
    %339 = arith.addf %337, %338 : vector<8x32xf32>
    %340 = math.tanh %339 : vector<8x32xf32>
    %341 = arith.mulf %336, %340 : vector<8x32xf32>
    %342 = arith.truncf %341 : vector<8x32xf32> to vector<8x32xbf16>
    %c0_57 = arith.constant 0 : index
    %c0_58 = arith.constant 0 : index
    %343 = vector.load %arg7[%c0_57, %c0_58] : memref<32x4xbf16, #tpu.memory_space<vmem>>, vector<32x4xbf16>
    %cst_59 = arith.constant dense<0.000000e+00> : vector<8x4xf32>
    %344 = tpu.matmul %342, %343, %cst_59 {dimension_numbers = #tpu.dot_dimension_numbers<[1], [0], [0], [1], [0, 0, 1, 1], [], []>} : vector<8x32xbf16>, vector<32x4xbf16>, vector<8x4xf32> -> vector<8x4xf32>
    %c0_60 = arith.constant 0 : index
    %c0_61 = arith.constant 0 : index
    %345 = vector.load %arg8[%c0_60, %c0_61] : memref<1x4xf32, #tpu.memory_space<vmem>>, vector<1x4xf32>
    %346 = vector.broadcast %345 : vector<1x4xf32> to vector<8x4xf32>
    %347 = arith.addf %344, %346 : vector<8x4xf32>
    %348 = vector.extract_strided_slice %347 {offsets = [0, 0], sizes = [2, 4], strides = [1, 1]} : vector<8x4xf32> to vector<2x4xf32>
    %c0_62 = arith.constant 0 : index
    %c0_63 = arith.constant 0 : index
    %349 = vector.load %arg9[%c0_62, %c0_63] : memref<2x4xf32, #tpu.memory_space<vmem>>, vector<2x4xf32>
    tpu.vector_store %arg9[%c0_62, %c0_63], %348 {strides = array<i32>} : memref<2x4xf32, #tpu.memory_space<vmem>>, vector<2x4xf32>,
    return
  }
}

</mosaic_0001>

<bundles_post_ra>
// kernel: my_network_lstm_forward.1
= control target key start
LH: loop header
LB: loop body
LE: loop exit
PB: predicated region body
PF: predicated region fallthrough
CT: control target
= control target key end

     0   :  { %vm74_vm0 = vcmask 130048   ;;  %s1873_s0 = inlined_call_operand.vmem [shape: bf16[64,16], index: 0, kind: input, shape index: {}]   ;;  %s1874_s1 = inlined_call_operand.vmem [shape: bf16[16,128], index: 1, kind: input, shape index: {}]   ;;  %s1875_s2 = inlined_call_operand.vmem [shape: bf16[32,128], index: 2, kind: input, shape index: {}]   ;;  %s1876_s3 = inlined_call_operand.vmem [shape: f32[1,128], index: 3, kind: input, shape index: {}]   ;;  %s1877_s4 = inlined_call_operand.vmem [shape: bf16[32,128], index: 4, kind: input, shape index: {}]   ;;  %s1878_s5 = inlined_call_operand.vmem [shape: bf16[32,128], index: 5, kind: input, shape index: {}]   ;;  %s1879_s6 = inlined_call_operand.vmem [shape: f32[1,128], index: 6, kind: input, shape index: {}]   ;;  %s1880_s7 = inlined_call_operand.vmem [shape: bf16[32,4], index: 7, kind: input, shape index: {}]   ;;  %s1881_s8 = inlined_call_operand.vmem [shape: f32[1,4], index: 8, kind: input, shape index: {}]   ;;  %s1882_s9 = inlined_call_operand.hbm [shape: f32[2,4], index: 9, kind: output, shape index: {}]  }
   0x1   :  { %v1354_v0 = vld [vmem:[%s1874_s1] sm:$0xff]  ;;  %v1586_v1 = vld [vmem:[%s1875_s2 + $0x8] sm:$0xff] }
   0x2   :  { %v1350_v2 = vld [vmem:[%s1873_s0] sm:$0xff]  ;;  %94 = vmatpush.bf16.msra.mxu0 %v1354_v0  ;;  %151 = vmatpush.bf16.msra.mxu1 %v1586_v1 }
   0x3   :  { %v1594_v3 = vld [vmem:[%s1875_s2] sm:$0xff] }
   0x4   :  { %14 = vsyncpa [#allocation3], 0  ;;  %v1526_v4 = vmov 0   ;;  %v1608_v5 = vld [vmem:[%s1876_s3] ss:$0 sm:$0xff]  ;;  %s1527_s17 = smov 64  }
   0x5   :  { %1275 = vmatmul.msk.bf16.vlgmr.msra.gmra.mxu0 %vm74_vm0, %v1350_v2  ;;  %s1528_s18 = smov 32   ;;  %v1620_v31 = vld [vmem:[%s1878_s5 + $0x8] sm:$0xff]  ;;  %v1631_v33 = vld [vmem:[%s1878_s5] sm:$0xff]  ;;  %vm141_vm5 = vcmask 261120   ;;  %s1246_s22 = sshll.u32 %s1882_s9, 4  ;;  %s1247_s22 = int_to_ptr.hbm [resolvable:$true] %s1246_s22 }
   0x6   :  { %687 = vmatpush.bf16.msrb.mxu0 %v1586_v1  ;;  %152 = vmatpush.bf16.msra.mxu1 %v1594_v3  ;;  %v1625_v32 = vld [vmem:[%s1877_s4 + $0x8] sm:$0xff]  ;;  %v1637_v34 = vld [vmem:[%s1877_s4] sm:$0xff] }
   0x7   :  { %215 = vmatpush.bf16.msra.mxu2 %v1620_v31  ;;  %246 = vmatpush.bf16.msra.mxu3 %v1625_v32  ;;  %v1659_v42 = vld [vmem:[%s1879_s6] ss:$0 sm:$0xff] }
   0x9   :  { %153 = vmatmul.bf16.vlgmr.msra.gmra.mxu1 %v1526_v4 }
   0xa   :  { %300 = vmatpush.bf16.msrb.mxu1 %v1586_v1  ;;  %688 = vmatpush.bf16.msrb.mxu0 %v1594_v3 }
   0xb   :  { %216 = vmatpush.bf16.msra.mxu2 %v1631_v33  ;;  %247 = vmatpush.bf16.msra.mxu3 %v1637_v34 }
   0xe   :  { %301 = vmatpush.bf16.msrb.mxu1 %v1594_v3  ;;  %875 = vmatpush.bf16.msra.mxu0 %v1620_v31 }
   0xf   :  { %359 = vmatpush.bf16.msrb.mxu2 %v1620_v31  ;;  %378 = vmatpush.bf16.msrb.mxu3 %v1625_v32 }
  0x10   :  { %217 = vmatmul.bf16.vlgmr.msra.gmra.mxu2 %v1526_v4 }
  0x12   :  { %429 = vmatpush.bf16.msra.mxu1 %v1586_v1  ;;  %876 = vmatpush.bf16.msra.mxu0 %v1631_v33 }
  0x13   :  { %360 = vmatpush.bf16.msrb.mxu2 %v1631_v33  ;;  %379 = vmatpush.bf16.msrb.mxu3 %v1637_v34 }
  0x16   :  { %430 = vmatpush.bf16.msra.mxu1 %v1594_v3 }
  0x17   :  { %488 = vmatpush.bf16.msra.mxu2 %v1620_v31 }
  0x1b   :  { %489 = vmatpush.bf16.msra.mxu2 %v1631_v33 }
  0x82   :  { %v96_v6 = vpop.f32.mrf.mxu0 }
  0x83   :  { %v97_v7 = vadd.f32 %v1608_v5, %v96_v6 }
  0x86   :  { %v154_v8 = vpop.f32.mrf.mxu1 }
  0x87   :  { %v158_v9 = vadd.f32 %v154_v8, %v97_v7 }
  0x89   :  { %1370 = vtanh.f32 %v158_v9  ;;  %v1287_v12 = vmul.f32 -1.442695, %v158_v9 }
  0x8a   :  { %v98_v47 = vpop.f32.mrf.mxu0 }
  0x8b   :  { %1372 = vpow2.f32 %v1287_v12  ;;  %v99_v48 = vadd.f32 %v1608_v5, %v98_v47 }
  0x8e   :  { %v156_v10 = vpop.f32.mrf.mxu1 }
  0x8f   :  { %v1371_v11 = vpop.eup %1370 }
  0x90   :  { %181 = vrot.lane.b32.xlu0 %v1371_v11, %s1527_s17 }
  0x91   :  { %v1373_v13 = vpop.eup %1372 }
  0x92   :  { %v162_v14 = vadd.f32 1.0, %v1373_v13 }
  0x93   :  { %v218_v38 = vpop.f32.mrf.mxu2 }
  0x94   :  { %1374 = vrcp.f32 %v162_v14  ;;  %v174_v20 = vand.u32 2147483648, %v162_v14  ;;  %vm168_vm2 = vweird.f32 %v162_v14  ;;  %v172_v21 = vand.u32 2147483647, %v162_v14 }
  0x96   :  { %v175_v23 = vor.u32 1.1754944e-38, %v174_v20  ;;  %vm173_vm4 = vcmp.eq.f32.partialorder %v172_v21, 8.507059e+37 }
  0x9a   :  { %v1375_v15 = vpop.eup %1374 }
  0x9b   :  { %v164_v16 = vmul.f32 %v1375_v15, %v162_v14  ;;  %vm169_vm1 = vweird.f32 %v1375_v15  ;;  %v220_v40 = vpop.f32.mrf.mxu2 }
  0x9c   :  { %vm170_vm3 = vmor %vm168_vm2, %vm169_vm1 }
  0x9d   :  { %v165_v17 = vsub.f32 1.0, %v164_v16 }
  0x9f   :  { %v166_v18 = vmul.f32 %v1375_v15, %v165_v17 }
  0xa1   :  { %v167_v19 = vadd.f32 %v1375_v15, %v166_v18 }
  0xa3   :  { %v171_v22 = vsel %vm170_vm3, %v1375_v15, %v167_v19 }
  0xa4   :  { %v176_v25 = vsel %vm173_vm4, %v175_v23, %v171_v22 }
  0xa5   :  { %v179_v27 = vmul.f32 0.0, %v176_v25 }
 0x102   :  { %v182_v24 = vpop.permute.xlu0 %181 }
 0x103   :  { %v184_v26 = vmul.f32 %v182_v24, %v176_v25 }
 0x105   :  { %186 = vrot.lane.b32.xlu0 %v184_v26, %s1528_s18 }
 0x177   :  { %v187_v28 = vpop.permute.xlu0 %186 }
 0x178   :  { %v1613_v29 = vadd.f32 %v187_v28, %v179_v27 }
 0x17a   :  { %1376 = vtanh.f32 %v1613_v29 }
 0x180   :  { %v1377_v30 = vpop.eup %1376 }
 0x181   :  { %192 = vrot.lane.b32.xlu1 %v1377_v30, %s1527_s17 }
 0x1f3   :  { %v193_v35 = vpop.permute.xlu1 %192 }
 0x1f4   :  { %v195_v36 = vmul.f32 %v193_v35, %v176_v25 }
 0x1f6   :  { %v196_v37 = vpack.c.bf16 %v195_v36, %v195_v36 }
 0x1f8   :  { %223 = vrot.lane.b32.xlu1 %v196_v37, %s1528_s18 }
 0x26a   :  { %v224_v39 = vpop.permute.xlu1 %223 }
 0x26b   :  { %1304 = vmatmul.msk.bf16.vlgmr.msra.gmra.mxu3 %vm141_vm5, %v224_v39  ;;  %1306 = vmatmul.msk.bf16.vlgmr.msrb.gmra.mxu1 %vm141_vm5, %v224_v39 }
 0x26c   :  { %558 = vmatpush.bf16.msrb.mxu1 %v1586_v1  ;;  %507 = vmatpush.bf16.msra.mxu3 %v1625_v32 }
 0x270   :  { %559 = vmatpush.bf16.msrb.mxu1 %v1594_v3  ;;  %508 = vmatpush.bf16.msra.mxu3 %v1637_v34 }
 0x2e8   :  { %v303_v41 = vpop.f32.mrf.mxu1 }
 0x2e9   :  { %v307_v50 = vadd.f32 %v303_v41, %v99_v48 }
 0x2eb   :  { %v1307_v54 = vmul.f32 -1.442695, %v307_v50 }
 0x2ee   :  { %v249_v43 = vpop.f32.mrf.mxu3 }
 0x2ef   :  { %v250_v44 = vadd.f32 %v249_v43, %v218_v38 }
 0x2f0   :  { %v305_v45 = vpop.f32.mrf.mxu1 }
 0x2f1   :  { %v256_v46 = vadd.f32 %v1659_v42, %v250_v44 }
 0x2f3   :  { %1378 = vtanh.f32 %v256_v46  ;;  %v1305_v53 = vmul.f32 -1.442695, %v256_v46 }
 0x2f4   :  { %1380 = vtanh.f32 %v307_v50 }
 0x2f5   :  { %1382 = vpow2.f32 %v1305_v53 }
 0x2f6   :  { %v251_v49 = vpop.f32.mrf.mxu3  ;;  %1384 = vpow2.f32 %v1307_v54 }
 0x2f9   :  { %v1379_v51 = vpop.eup %1378 }
 0x2fa   :  { %279 = vrot.lane.b32.xlu2 %v1379_v51, %s1527_s17  ;;  %v1381_v52 = vpop.eup %1380 }
 0x2fb   :  { %v1383_v55 = vpop.eup %1382 }
 0x2fc   :  { %v260_v56 = vadd.f32 1.0, %v1383_v55  ;;  %v1385_v57 = vpop.eup %1384 }
 0x2fd   :  { %v311_v58 = vadd.f32 1.0, %v1385_v57 }
 0x2fe   :  { %1386 = vrcp.f32 %v260_v56  ;;  %v272_v6 = vand.u32 2147483648, %v260_v56  ;;  %vm266_vm7 = vweird.f32 %v260_v56  ;;  %v270_v7 = vand.u32 2147483647, %v260_v56 }
 0x2ff   :  { %1388 = vrcp.f32 %v311_v58  ;;  %v323_v15 = vand.u32 2147483648, %v311_v58  ;;  %vm317_vm11 = vweird.f32 %v311_v58  ;;  %v321_v16 = vand.u32 2147483647, %v311_v58 }
 0x300   :  { %v273_v10 = vor.u32 1.1754944e-38, %v272_v6  ;;  %vm271_vm9 = vcmp.eq.f32.partialorder %v270_v7, 8.507059e+37 }
 0x301   :  { %v324_v18 = vor.u32 1.1754944e-38, %v323_v15  ;;  %vm322_vm13 = vcmp.eq.f32.partialorder %v321_v16, 8.507059e+37 }
 0x302   :  { %330 = vrot.lane.b32.xlu2 %v1381_v52, %s1527_s17 }
 0x304   :  { %v1387_v59 = vpop.eup %1386 }
 0x305   :  { %v262_v60 = vmul.f32 %v1387_v59, %v260_v56  ;;  %v1389_v62 = vpop.eup %1388  ;;  %vm267_vm6 = vweird.f32 %v1387_v59 }
 0x306   :  { %v313_v0 = vmul.f32 %v1389_v62, %v311_v58  ;;  %vm268_vm8 = vmor %vm266_vm7, %vm267_vm6  ;;  %vm318_vm10 = vweird.f32 %v1389_v62 }
 0x307   :  { %v263_v61 = vsub.f32 1.0, %v262_v60  ;;  %vm319_vm12 = vmor %vm317_vm11, %vm318_vm10 }
 0x308   :  { %v314_v4 = vsub.f32 1.0, %v313_v0 }
 0x309   :  { %v264_v63 = vmul.f32 %v1387_v59, %v263_v61 }
 0x30a   :  { %v315_v9 = vmul.f32 %v1389_v62, %v314_v4 }
 0x30b   :  { %v265_v2 = vadd.f32 %v1387_v59, %v264_v63 }
 0x30c   :  { %v316_v14 = vadd.f32 %v1389_v62, %v315_v9 }
 0x30d   :  { %v269_v8 = vsel %vm268_vm8, %v1387_v59, %v265_v2 }
 0x30e   :  { %v274_v12 = vsel %vm271_vm9, %v273_v10, %v269_v8  ;;  %v320_v17 = vsel %vm319_vm12, %v1389_v62, %v316_v14 }
 0x30f   :  { %v325_v19 = vsel %vm322_vm13, %v324_v18, %v320_v17  ;;  %v277_v22 = vmul.f32 0.0, %v274_v12 }
 0x310   :  { %v328_v25 = vmul.f32 %v325_v19, %v1613_v29  ;;  %v1351_v29 = vld [vmem:[%s1873_s0 + $0x8] sm:$0xff] }
 0x311   :  { %1276 = vmatmul.msk.bf16.gmra.mxu0 %vm74_vm0, %v1351_v29 }
 0x354   :  { %v280_v11 = vpop.permute.xlu2 %279 }
 0x355   :  { %v282_v13 = vmul.f32 %v280_v11, %v274_v12 }
 0x357   :  { %284 = vrot.lane.b32.xlu0 %v282_v13, %s1528_s18 }
 0x35c   :  { %v331_v20 = vpop.permute.xlu2 %330 }
 0x35d   :  { %v333_v21 = vmul.f32 %v331_v20, %v325_v19 }
 0x35f   :  { %335 = vrot.lane.b32.xlu1 %v333_v21, %s1528_s18 }
 0x38e   :  { %v101_v44 = vpop.f32.mrf.mxu0 }
 0x38f   :  { %v102_v45 = vadd.f32 %v1608_v5, %v101_v44 }
 0x3c9   :  { %v285_v23 = vpop.permute.xlu0 %284 }
 0x3ca   :  { %v1667_v24 = vadd.f32 %v285_v23, %v277_v22 }
 0x3cc   :  { %1390 = vtanh.f32 %v1667_v24 }
 0x3d1   :  { %v336_v26 = vpop.permute.xlu1 %335 }
 0x3d2   :  { %v1391_v27 = vpop.eup %1390  ;;  %v1671_v28 = vadd.f32 %v336_v26, %v328_v25 }
 0x3d3   :  { %290 = vrot.lane.b32.xlu2 %v1391_v27, %s1527_s17 }
 0x3d4   :  { %1392 = vtanh.f32 %v1671_v28 }
 0x3da   :  { %v1393_v30 = vpop.eup %1392 }
 0x3db   :  { %341 = vrot.lane.b32.xlu0 %v1393_v30, %s1527_s17 }
 0x42d   :  { %v291_v35 = vpop.permute.xlu2 %290 }
 0x42e   :  { %v293_v36 = vmul.f32 %v291_v35, %v274_v12 }
 0x430   :  { %v346_v37 = vpack.c.bf16 %v293_v36, %v293_v36 }
 0x432   :  { %348 = vrot.lane.b32.xlu1 %v346_v37, %s1528_s18 }
 0x44d   :  { %v342_v38 = vpop.permute.xlu0 %341 }
 0x44e   :  { %v344_v39 = vmul.f32 %v342_v38, %v325_v19 }
 0x450   :  { %v345_v40 = vpack.c.bf16 %v344_v39, %v344_v39 }
 0x452   :  { %367 = vrot.lane.b32.xlu2 %v345_v40, %s1528_s18 }
 0x4a4   :  { %v349_v41 = vpop.permute.xlu1 %348 }
 0x4a5   :  { %1308 = vmatmul.msk.bf16.vlgmr.msrb.gmra.mxu2 %vm141_vm5, %v349_v41 }
 0x4a6   :  { %617 = vmatpush.bf16.msrb.mxu2 %v1620_v31 }
 0x4aa   :  { %618 = vmatpush.bf16.msrb.mxu2 %v1631_v33 }
 0x4ac   :  { %v368_v43 = vpop.permute.xlu2 %367 }
 0x4ad   :  { %1309 = vmatmul.msk.bf16.vlgmr.msrb.gmra.mxu3 %vm141_vm5, %v368_v43  ;;  %1311 = vmatmul.msk.bf16.vlgmr.msra.gmra.mxu1 %vm141_vm5, %v368_v43 }
 0x4ae   :  { %636 = vmatpush.bf16.msrb.mxu3 %v1625_v32  ;;  %746 = vmatpush.bf16.msra.mxu1 %v1620_v31 }
 0x4b2   :  { %637 = vmatpush.bf16.msrb.mxu3 %v1637_v34  ;;  %747 = vmatpush.bf16.msra.mxu1 %v1631_v33 }
 0x528   :  { %v362_v46 = vpop.f32.mrf.mxu2 }
 0x52a   :  { %v432_v47 = vpop.f32.mrf.mxu1 }
 0x52b   :  { %v436_v48 = vadd.f32 %v432_v47, %v102_v45  ;;  %v103_v47 = vpop.f32.mrf.mxu0 }
 0x52d   :  { %1394 = vtanh.f32 %v436_v48  ;;  %v1312_v57 = vmul.f32 -1.442695, %v436_v48  ;;  %v104_v48 = vadd.f32 %v1608_v5, %v103_v47 }
 0x530   :  { %v364_v49 = vpop.f32.mrf.mxu2  ;;  %v381_v50 = vpop.f32.mrf.mxu3 }
 0x531   :  { %v382_v51 = vadd.f32 %v381_v50, %v362_v46 }
 0x532   :  { %v434_v52 = vpop.f32.mrf.mxu1 }
 0x533   :  { %v1395_v53 = vpop.eup %1394  ;;  %v385_v54 = vadd.f32 %v1659_v42, %v382_v51 }
 0x534   :  { %459 = vrot.lane.b32.xlu1 %v1395_v53, %s1527_s17 }
 0x535   :  { %1396 = vtanh.f32 %v385_v54  ;;  %v1310_v58 = vmul.f32 -1.442695, %v385_v54 }
 0x536   :  { %1398 = vpow2.f32 %v1312_v57 }
 0x537   :  { %1400 = vpow2.f32 %v1310_v58 }
 0x538   :  { %v383_v55 = vpop.f32.mrf.mxu3 }
 0x53b   :  { %v1397_v56 = vpop.eup %1396 }
 0x53c   :  { %408 = vrot.lane.b32.xlu0 %v1397_v56, %s1527_s17  ;;  %v1399_v59 = vpop.eup %1398 }
 0x53d   :  { %v440_v60 = vadd.f32 1.0, %v1399_v59  ;;  %v1401_v61 = vpop.eup %1400 }
 0x53e   :  { %v389_v62 = vadd.f32 1.0, %v1401_v61 }
 0x53f   :  { %1402 = vrcp.f32 %v440_v60  ;;  %v452_v10 = vand.u32 2147483648, %v440_v60  ;;  %vm446_vm15 = vweird.f32 %v440_v60  ;;  %v450_v11 = vand.u32 2147483647, %v440_v60 }
 0x540   :  { %1404 = vrcp.f32 %v389_v62  ;;  %v401_v19 = vand.u32 2147483648, %v389_v62  ;;  %vm395_vm4 = vweird.f32 %v389_v62  ;;  %v399_v20 = vand.u32 2147483647, %v389_v62 }
 0x541   :  { %v453_v14 = vor.u32 1.1754944e-38, %v452_v10  ;;  %vm451_vm2 = vcmp.eq.f32.partialorder %v450_v11, 8.507059e+37 }
 0x542   :  { %v402_v22 = vor.u32 1.1754944e-38, %v401_v19  ;;  %vm400_vm7 = vcmp.eq.f32.partialorder %v399_v20, 8.507059e+37 }
 0x545   :  { %v1403_v63 = vpop.eup %1402 }
 0x546   :  { %v442_v0 = vmul.f32 %v1403_v63, %v440_v60  ;;  %v1405_v4 = vpop.eup %1404  ;;  %vm447_vm14 = vweird.f32 %v1403_v63 }
 0x547   :  { %v391_v7 = vmul.f32 %v1405_v4, %v389_v62  ;;  %vm448_vm1 = vmor %vm446_vm15, %vm447_vm14  ;;  %vm396_vm3 = vweird.f32 %v1405_v4 }
 0x548   :  { %v443_v2 = vsub.f32 1.0, %v442_v0  ;;  %vm397_vm6 = vmor %vm395_vm4, %vm396_vm3 }
 0x549   :  { %v392_v9 = vsub.f32 1.0, %v391_v7 }
 0x54a   :  { %v444_v6 = vmul.f32 %v1403_v63, %v443_v2 }
 0x54b   :  { %v393_v13 = vmul.f32 %v1405_v4, %v392_v9 }
 0x54c   :  { %v445_v8 = vadd.f32 %v1403_v63, %v444_v6 }
 0x54d   :  { %v394_v18 = vadd.f32 %v1405_v4, %v393_v13 }
 0x54e   :  { %v449_v12 = vsel %vm448_vm1, %v1403_v63, %v445_v8 }
 0x54f   :  { %v454_v16 = vsel %vm451_vm2, %v453_v14, %v449_v12  ;;  %v398_v21 = vsel %vm397_vm6, %v1405_v4, %v394_v18 }
 0x550   :  { %v403_v25 = vsel %vm400_vm7, %v402_v22, %v398_v21  ;;  %v457_v37 = vmul.f32 %v454_v16, %v1671_v28 }
 0x551   :  { %v406_v27 = vmul.f32 %v403_v25, %v1667_v24 }
 0x5a6   :  { %v460_v15 = vpop.permute.xlu1 %459 }
 0x5a7   :  { %v462_v17 = vmul.f32 %v460_v15, %v454_v16 }
 0x5a9   :  { %464 = vrot.lane.b32.xlu0 %v462_v17, %s1528_s18 }
 0x5ae   :  { %v409_v23 = vpop.permute.xlu0 %408 }
 0x5af   :  { %v411_v26 = vmul.f32 %v409_v23, %v403_v25 }
 0x5b1   :  { %413 = vrot.lane.b32.xlu2 %v411_v26, %s1528_s18 }
 0x60b   :  { %v414_v30 = vpop.permute.xlu2 %413 }
 0x60c   :  { %v1698_v35 = vadd.f32 %v414_v30, %v406_v27 }
 0x60e   :  { %1406 = vtanh.f32 %v1698_v35 }
 0x614   :  { %v1407_v36 = vpop.eup %1406 }
 0x615   :  { %419 = vrot.lane.b32.xlu1 %v1407_v36, %s1527_s17 }
 0x61b   :  { %v465_v29 = vpop.permute.xlu0 %464 }
 0x61c   :  { %v1703_v38 = vadd.f32 %v465_v29, %v457_v37 }
 0x61e   :  { %1408 = vtanh.f32 %v1703_v38 }
 0x624   :  { %v1409_v39 = vpop.eup %1408 }
 0x625   :  { %470 = vrot.lane.b32.xlu2 %v1409_v39, %s1527_s17 }
 0x67f   :  { %v471_v40 = vpop.permute.xlu2 %470 }
 0x680   :  { %v473_v24 = vmul.f32 %v471_v40, %v454_v16 }
 0x682   :  { %v474_v41 = vpack.c.bf16 %v473_v24, %v473_v24 }
 0x684   :  { %496 = vrot.lane.b32.xlu1 %v474_v41, %s1528_s18 }
 0x687   :  { %v420_v43 = vpop.permute.xlu1 %419 }
 0x688   :  { %v422_v44 = vmul.f32 %v420_v43, %v403_v25 }
 0x68a   :  { %v475_v45 = vpack.c.bf16 %v422_v44, %v422_v44 }
 0x68c   :  { %477 = vrot.lane.b32.xlu0 %v475_v45, %s1528_s18 }
 0x6f6   :  { %v497_v46 = vpop.permute.xlu1 %496 }
 0x6f7   :  { %1314 = vmatmul.msk.bf16.vlgmr.msra.gmra.mxu3 %vm141_vm5, %v497_v46  ;;  %1316 = vmatmul.msk.bf16.vlgmr.msrb.gmra.mxu1 %vm141_vm5, %v497_v46 }
 0x6f8   :  { %816 = vmatpush.bf16.msra.mxu3 %v1586_v1  ;;  %894 = vmatpush.bf16.msrb.mxu1 %v1625_v32 }
 0x6fc   :  { %817 = vmatpush.bf16.msra.mxu3 %v1594_v3  ;;  %895 = vmatpush.bf16.msrb.mxu1 %v1637_v34 }
 0x6fe   :  { %v478_v28 = vpop.permute.xlu0 %477 }
 0x6ff   :  { %1313 = vmatmul.msk.bf16.vlgmr.msra.gmra.mxu2 %vm141_vm5, %v478_v28 }
 0x700   :  { %765 = vmatpush.bf16.msra.mxu2 %v1625_v32 }
 0x704   :  { %766 = vmatpush.bf16.msra.mxu2 %v1637_v34 }
 0x774   :  { %v561_v49 = vpop.f32.mrf.mxu1 }
 0x775   :  { %v565_v50 = vadd.f32 %v561_v49, %v104_v48 }
 0x777   :  { %1410 = vtanh.f32 %v565_v50  ;;  %v1317_v61 = vmul.f32 -1.442695, %v565_v50 }
 0x77a   :  { %v510_v51 = vpop.f32.mrf.mxu3 }
 0x77c   :  { %v563_v52 = vpop.f32.mrf.mxu1 }
 0x77d   :  { %v1411_v53 = vpop.eup %1410 }
 0x77e   :  { %588 = vrot.lane.b32.xlu0 %v1411_v53, %s1527_s17 }
 0x782   :  { %v491_v54 = vpop.f32.mrf.mxu2  ;;  %v512_v55 = vpop.f32.mrf.mxu3 }
 0x783   :  { %v511_v56 = vadd.f32 %v510_v51, %v491_v54 }
 0x785   :  { %v514_v57 = vadd.f32 %v1659_v42, %v511_v56 }
 0x787   :  { %1412 = vtanh.f32 %v514_v57  ;;  %v1315_v60 = vmul.f32 -1.442695, %v514_v57 }
 0x789   :  { %1414 = vpow2.f32 %v1315_v60 }
 0x78a   :  { %v493_v58 = vpop.f32.mrf.mxu2  ;;  %1416 = vpow2.f32 %v1317_v61 }
 0x78d   :  { %v1413_v59 = vpop.eup %1412 }
 0x78e   :  { %537 = vrot.lane.b32.xlu2 %v1413_v59, %s1527_s17 }
 0x78f   :  { %v1415_v62 = vpop.eup %1414 }
 0x790   :  { %v518_v63 = vadd.f32 1.0, %v1415_v62  ;;  %v1417_v0 = vpop.eup %1416 }
 0x791   :  { %v569_v2 = vadd.f32 1.0, %v1417_v0 }
 0x792   :  { %1418 = vrcp.f32 %v518_v63  ;;  %v530_v13 = vand.u32 2147483648, %v518_v63  ;;  %vm524_vm9 = vweird.f32 %v518_v63  ;;  %v528_v14 = vand.u32 2147483647, %v518_v63 }
 0x793   :  { %1420 = vrcp.f32 %v569_v2  ;;  %v581_v22 = vand.u32 2147483648, %v569_v2  ;;  %vm575_vm13 = vweird.f32 %v569_v2  ;;  %v579_v23 = vand.u32 2147483647, %v569_v2 }
 0x794   :  { %v531_v17 = vor.u32 1.1754944e-38, %v530_v13  ;;  %vm529_vm11 = vcmp.eq.f32.partialorder %v528_v14, 8.507059e+37 }
 0x795   :  { %v582_v26 = vor.u32 1.1754944e-38, %v581_v22  ;;  %vm580_vm15 = vcmp.eq.f32.partialorder %v579_v23, 8.507059e+37 }
 0x798   :  { %v1419_v4 = vpop.eup %1418 }
 0x799   :  { %v520_v6 = vmul.f32 %v1419_v4, %v518_v63  ;;  %v1421_v8 = vpop.eup %1420  ;;  %vm525_vm8 = vweird.f32 %v1419_v4 }
 0x79a   :  { %v571_v10 = vmul.f32 %v1421_v8, %v569_v2  ;;  %vm526_vm10 = vmor %vm524_vm9, %vm525_vm8  ;;  %vm576_vm12 = vweird.f32 %v1421_v8 }
 0x79b   :  { %v521_v7 = vsub.f32 1.0, %v520_v6  ;;  %vm577_vm14 = vmor %vm575_vm13, %vm576_vm12 }
 0x79c   :  { %v572_v12 = vsub.f32 1.0, %v571_v10 }
 0x79d   :  { %v522_v9 = vmul.f32 %v1419_v4, %v521_v7 }
 0x79e   :  { %v573_v16 = vmul.f32 %v1421_v8, %v572_v12 }
 0x79f   :  { %v523_v11 = vadd.f32 %v1419_v4, %v522_v9 }
 0x7a0   :  { %v574_v21 = vadd.f32 %v1421_v8, %v573_v16 }
 0x7a1   :  { %v527_v15 = vsel %vm526_vm10, %v1419_v4, %v523_v11 }
 0x7a2   :  { %v532_v19 = vsel %vm529_vm11, %v531_v17, %v527_v15  ;;  %v578_v25 = vsel %vm577_vm14, %v1421_v8, %v574_v21 }
 0x7a3   :  { %v583_v30 = vsel %vm580_vm15, %v582_v26, %v578_v25  ;;  %v535_v24 = vmul.f32 %v532_v19, %v1698_v35  ;;  %v1353_v35 = vld [vmem:[%s1873_s0 + $0x18] sm:$0xff] }
 0x7a4   :  { %v586_v37 = vmul.f32 %v583_v30, %v1703_v38  ;;  %v1352_v38 = vld [vmem:[%s1873_s0 + $0x10] sm:$0xff] }
 0x7a5   :  { %1277 = vmatmul.msk.bf16.gmra.mxu0 %vm74_vm0, %v1352_v38 }
 0x7b5   :  { %1278 = vmatmul.msk.bf16.gmra.mxu0 %vm74_vm0, %v1353_v35 }
 0x7e8   :  { %v538_v18 = vpop.permute.xlu2 %537 }
 0x7e9   :  { %v540_v20 = vmul.f32 %v538_v18, %v532_v19 }
 0x7eb   :  { %542 = vrot.lane.b32.xlu1 %v540_v20, %s1528_s18 }
 0x7f0   :  { %v589_v27 = vpop.permute.xlu0 %588 }
 0x7f1   :  { %v591_v36 = vmul.f32 %v589_v27, %v583_v30 }
 0x7f3   :  { %593 = vrot.lane.b32.xlu2 %v591_v36, %s1528_s18 }
 0x822   :  { %v106_v52 = vpop.f32.mrf.mxu0 }
 0x823   :  { %v107_v57 = vadd.f32 %v1608_v5, %v106_v52 }
 0x82a   :  { %v1753_v53 = vpop.f32.mrf.mxu0 }
 0x832   :  { %v1755_v54 = vpop.f32.mrf.mxu0 }
 0x83a   :  { %v1757_v55 = vpop.f32.mrf.mxu0 }
 0x84d   :  { %v594_v29 = vpop.permute.xlu2 %593 }
 0x84e   :  { %v1725_v39 = vadd.f32 %v594_v29, %v586_v37 }
 0x850   :  { %1422 = vtanh.f32 %v1725_v39 }
 0x856   :  { %v1423_v40 = vpop.eup %1422 }
 0x857   :  { %599 = vrot.lane.b32.xlu1 %v1423_v40, %s1527_s17 }
 0x85d   :  { %v543_v41 = vpop.permute.xlu1 %542 }
 0x85e   :  { %v1730_v43 = vadd.f32 %v543_v41, %v535_v24 }
 0x860   :  { %1424 = vtanh.f32 %v1730_v43 }
 0x866   :  { %v1425_v44 = vpop.eup %1424 }
 0x867   :  { %548 = vrot.lane.b32.xlu0 %v1425_v44, %s1527_s17 }
 0x8c9   :  { %v600_v45 = vpop.permute.xlu1 %599 }
 0x8ca   :  { %v602_v46 = vmul.f32 %v600_v45, %v583_v30 }
 0x8cc   :  { %v603_v28 = vpack.c.bf16 %v602_v46, %v602_v46 }
 0x8ce   :  { %625 = vrot.lane.b32.xlu0 %v603_v28, %s1528_s18 }
 0x8d9   :  { %v549_v47 = vpop.permute.xlu0 %548 }
 0x8da   :  { %v551_v48 = vmul.f32 %v549_v47, %v532_v19 }
 0x8dc   :  { %v604_v49 = vpack.c.bf16 %v551_v48, %v551_v48 }
 0x8de   :  { %606 = vrot.lane.b32.xlu2 %v604_v49, %s1528_s18 }
 0x938   :  { %v607_v50 = vpop.permute.xlu2 %606 }
 0x939   :  { %1318 = vmatmul.msk.bf16.vlgmr.msrb.gmra.mxu2 %vm141_vm5, %v607_v50 }
 0x93a   :  { %945 = vmatpush.bf16.msrb.mxu2 %v1586_v1 }
 0x93e   :  { %946 = vmatpush.bf16.msrb.mxu2 %v1594_v3 }
 0x940   :  { %v626_v51 = vpop.permute.xlu0 %625 }
 0x941   :  { %1319 = vmatmul.msk.bf16.vlgmr.msrb.gmra.mxu3 %vm141_vm5, %v626_v51  ;;  %1321 = vmatmul.msk.bf16.vlgmr.msrb.gmra.mxu0 %vm141_vm5, %v626_v51 }
 0x942   :  { %1004 = vmatpush.bf16.msrb.mxu3 %v1620_v31  ;;  %1023 = vmatpush.bf16.msrb.mxu0 %v1625_v32 }
 0x946   :  { %1005 = vmatpush.bf16.msrb.mxu3 %v1631_v33  ;;  %1024 = vmatpush.bf16.msrb.mxu0 %v1637_v34 }
 0x9bc   :  { %v620_v56 = vpop.f32.mrf.mxu2 }
 0x9be   :  { %v690_v58 = vpop.f32.mrf.mxu0 }
 0x9bf   :  { %v694_v59 = vadd.f32 %v690_v58, %v107_v57 }
 0x9c1   :  { %1426 = vtanh.f32 %v694_v59  ;;  %v1322_v10 = vmul.f32 -1.442695, %v694_v59 }
 0x9c4   :  { %v622_v60 = vpop.f32.mrf.mxu2  ;;  %v639_v61 = vpop.f32.mrf.mxu3 }
 0x9c5   :  { %v640_v62 = vadd.f32 %v639_v61, %v620_v56 }
 0x9c6   :  { %v692_v63 = vpop.f32.mrf.mxu0 }
 0x9c7   :  { %v1427_v0 = vpop.eup %1426  ;;  %v643_v2 = vadd.f32 %v1659_v42, %v640_v62 }
 0x9c8   :  { %717 = vrot.lane.b32.xlu1 %v1427_v0, %s1527_s17 }
 0x9c9   :  { %1428 = vtanh.f32 %v643_v2  ;;  %v1320_v7 = vmul.f32 -1.442695, %v643_v2 }
 0x9cb   :  { %1430 = vpow2.f32 %v1320_v7 }
 0x9cc   :  { %v641_v4 = vpop.f32.mrf.mxu3 }
 0x9cf   :  { %v1429_v6 = vpop.eup %1428 }
 0x9d0   :  { %666 = vrot.lane.b32.xlu2 %v1429_v6, %s1527_s17 }
 0x9d1   :  { %v1431_v8 = vpop.eup %1430 }
 0x9d2   :  { %v647_v9 = vadd.f32 1.0, %v1431_v8 }
 0x9d4   :  { %1432 = vrcp.f32 %v647_v9  ;;  %v659_v19 = vand.u32 2147483648, %v647_v9  ;;  %vm653_vm1 = vweird.f32 %v647_v9  ;;  %v657_v20 = vand.u32 2147483647, %v647_v9 }
 0x9d5   :  { %1434 = vpow2.f32 %v1322_v10 }
 0x9d6   :  { %v660_v23 = vor.u32 1.1754944e-38, %v659_v19  ;;  %vm658_vm3 = vcmp.eq.f32.partialorder %v657_v20, 8.507059e+37 }
 0x9da   :  { %v1433_v11 = vpop.eup %1432 }
 0x9db   :  { %v1435_v12 = vpop.eup %1434  ;;  %v649_v13 = vmul.f32 %v1433_v11, %v647_v9  ;;  %vm654_vm0 = vweird.f32 %v1433_v11 }
 0x9dc   :  { %v698_v14 = vadd.f32 1.0, %v1435_v12  ;;  %vm655_vm2 = vmor %vm653_vm1, %vm654_vm0 }
 0x9dd   :  { %v650_v15 = vsub.f32 1.0, %v649_v13 }
 0x9de   :  { %1436 = vrcp.f32 %v698_v14  ;;  %v710_v29 = vand.u32 2147483648, %v698_v14  ;;  %vm704_vm6 = vweird.f32 %v698_v14  ;;  %v708_v40 = vand.u32 2147483647, %v698_v14 }
 0x9df   :  { %v651_v16 = vmul.f32 %v1433_v11, %v650_v15 }
 0x9e0   :  { %v711_v41 = vor.u32 1.1754944e-38, %v710_v29  ;;  %vm709_vm8 = vcmp.eq.f32.partialorder %v708_v40, 8.507059e+37 }
 0x9e1   :  { %v652_v17 = vadd.f32 %v1433_v11, %v651_v16 }
 0x9e3   :  { %v656_v21 = vsel %vm655_vm2, %v1433_v11, %v652_v17 }
 0x9e4   :  { %v1437_v18 = vpop.eup %1436  ;;  %v661_v26 = vsel %vm658_vm3, %v660_v23, %v656_v21 }
 0x9e5   :  { %v700_v22 = vmul.f32 %v1437_v18, %v698_v14  ;;  %vm705_vm4 = vweird.f32 %v1437_v18  ;;  %v664_v46 = vmul.f32 %v661_v26, %v1730_v43 }
 0x9e6   :  { %vm706_vm7 = vmor %vm704_vm6, %vm705_vm4 }
 0x9e7   :  { %v701_v30 = vsub.f32 1.0, %v700_v22 }
 0x9e9   :  { %v702_v36 = vmul.f32 %v1437_v18, %v701_v30 }
 0x9eb   :  { %v703_v37 = vadd.f32 %v1437_v18, %v702_v36 }
 0x9ed   :  { %v707_v24 = vsel %vm706_vm7, %v1437_v18, %v703_v37 }
 0x9ee   :  { %v712_v38 = vsel %vm709_vm8, %v711_v41, %v707_v24 }
 0x9ef   :  { %v715_v48 = vmul.f32 %v712_v38, %v1725_v39 }
 0xa2a   :  { %v667_v25 = vpop.permute.xlu2 %666 }
 0xa2b   :  { %v669_v27 = vmul.f32 %v667_v25, %v661_v26 }
 0xa2d   :  { %671 = vrot.lane.b32.xlu1 %v669_v27, %s1528_s18 }
 0xa3a   :  { %v718_v44 = vpop.permute.xlu1 %717 }
 0xa3b   :  { %v720_v45 = vmul.f32 %v718_v44, %v712_v38 }
 0xa3d   :  { %722 = vrot.lane.b32.xlu0 %v720_v45, %s1528_s18 }
 0xa9f   :  { %v672_v28 = vpop.permute.xlu1 %671 }
 0xaa0   :  { %v1766_v35 = vadd.f32 %v672_v28, %v664_v46 }
 0xaa2   :  { %1438 = vtanh.f32 %v1766_v35 }
 0xaa8   :  { %v1439_v47 = vpop.eup %1438 }
 0xaa9   :  { %677 = vrot.lane.b32.xlu0 %v1439_v47, %s1527_s17 }
 0xaaf   :  { %v723_v49 = vpop.permute.xlu0 %722 }
 0xab0   :  { %v1771_v50 = vadd.f32 %v723_v49, %v715_v48 }
 0xab2   :  { %1440 = vtanh.f32 %v1771_v50 }
 0xab8   :  { %v1441_v51 = vpop.eup %1440 }
 0xab9   :  { %728 = vrot.lane.b32.xlu2 %v1441_v51, %s1527_s17 }
 0xb13   :  { %v729_v52 = vpop.permute.xlu2 %728 }
 0xb14   :  { %v731_v43 = vmul.f32 %v729_v52, %v712_v38 }
 0xb16   :  { %v732_v56 = vpack.c.bf16 %v731_v43, %v731_v43 }
 0xb18   :  { %754 = vrot.lane.b32.xlu1 %v732_v56, %s1528_s18 }
 0xb1b   :  { %v678_v57 = vpop.permute.xlu0 %677 }
 0xb1c   :  { %v680_v58 = vmul.f32 %v678_v57, %v661_v26 }
 0xb1e   :  { %v733_v59 = vpack.c.bf16 %v680_v58, %v680_v58 }
 0xb20   :  { %735 = vrot.lane.b32.xlu2 %v733_v59, %s1528_s18 }
 0xb7a   :  { %v736_v60 = vpop.permute.xlu2 %735 }
 0xb7b   :  { %1323 = vmatmul.msk.bf16.vlgmr.msra.gmra.mxu1 %vm141_vm5, %v736_v60 }
 0xb7c   :  { %1074 = vmatpush.bf16.msra.mxu1 %v1586_v1  ;;  %v109_v1 = vadd.f32 %v1608_v5, %v1753_v53 }
 0xb80   :  { %1075 = vmatpush.bf16.msra.mxu1 %v1594_v3 }
 0xb8a   :  { %v755_v39 = vpop.permute.xlu1 %754 }
 0xb8b   :  { %1324 = vmatmul.msk.bf16.vlgmr.msra.gmra.mxu2 %vm141_vm5, %v755_v39  ;;  %1326 = vmatmul.msk.bf16.vlgmr.msra.gmra.mxu3 %vm141_vm5, %v755_v39 }
 0xb8c   :  { %1152 = vmatpush.bf16.msra.mxu3 %v1625_v32  ;;  %1133 = vmatpush.bf16.msra.mxu2 %v1620_v31 }
 0xb90   :  { %1153 = vmatpush.bf16.msra.mxu3 %v1637_v34  ;;  %1134 = vmatpush.bf16.msra.mxu2 %v1631_v33 }
 0xbf8   :  { %v749_v61 = vpop.f32.mrf.mxu1 }
 0xc00   :  { %v751_v62 = vpop.f32.mrf.mxu1 }
 0xc0e   :  { %v768_v63 = vpop.f32.mrf.mxu2  ;;  %v819_v3 = vpop.f32.mrf.mxu3 }
 0xc0f   :  { %v769_v0 = vadd.f32 %v768_v63, %v749_v61  ;;  %v823_v2 = vadd.f32 %v819_v3, %v109_v1  ;;  %v1811_v61 = vld [vmem:[%s1876_s3] ss:$0 sm:$0xff] }
 0xc10   :  { %v112_v62 = vadd.f32 %v1811_v61, %v1755_v54 }
 0xc11   :  { %v772_v4 = vadd.f32 %v1659_v42, %v769_v0  ;;  %1442 = vtanh.f32 %v823_v2  ;;  %v1327_v33 = vmul.f32 -1.442695, %v823_v2 }
 0xc13   :  { %1444 = vtanh.f32 %v772_v4  ;;  %v1325_v7 = vmul.f32 -1.442695, %v772_v4 }
 0xc14   :  { %1446 = vpow2.f32 %v1327_v33 }
 0xc15   :  { %1448 = vpow2.f32 %v1325_v7 }
 0xc16   :  { %v770_v32 = vpop.f32.mrf.mxu2  ;;  %v821_v6 = vpop.f32.mrf.mxu3 }
 0xc17   :  { %v1443_v31 = vpop.eup %1442 }
 0xc18   :  { %846 = vrot.lane.b32.xlu1 %v1443_v31, %s1527_s17 }
 0xc19   :  { %v1445_v34 = vpop.eup %1444 }
 0xc1a   :  { %795 = vrot.lane.b32.xlu0 %v1445_v34, %s1527_s17  ;;  %v1447_v5 = vpop.eup %1446 }
 0xc1b   :  { %v1449_v53 = vpop.eup %1448  ;;  %v827_v8 = vadd.f32 1.0, %v1447_v5 }
 0xc1c   :  { %v776_v9 = vadd.f32 1.0, %v1449_v53 }
 0xc1d   :  { %1450 = vrcp.f32 %v827_v8  ;;  %v839_v19 = vand.u32 2147483648, %v827_v8  ;;  %vm833_vm10 = vweird.f32 %v827_v8  ;;  %v837_v20 = vand.u32 2147483647, %v827_v8 }
 0xc1e   :  { %1452 = vrcp.f32 %v776_v9  ;;  %v788_v22 = vand.u32 2147483648, %v776_v9  ;;  %vm782_vm13 = vweird.f32 %v776_v9  ;;  %v786_v25 = vand.u32 2147483647, %v776_v9 }
 0xc1f   :  { %v840_v26 = vor.u32 1.1754944e-38, %v839_v19  ;;  %vm838_vm15 = vcmp.eq.f32.partialorder %v837_v20, 8.507059e+37 }
 0xc20   :  { %v789_v37 = vor.u32 1.1754944e-38, %v788_v22  ;;  %vm787_vm0 = vcmp.eq.f32.partialorder %v786_v25, 8.507059e+37 }
 0xc23   :  { %v1451_v10 = vpop.eup %1450 }
 0xc24   :  { %v1453_v11 = vpop.eup %1452  ;;  %v829_v12 = vmul.f32 %v1451_v10, %v827_v8  ;;  %vm834_vm9 = vweird.f32 %v1451_v10 }
 0xc25   :  { %v778_v13 = vmul.f32 %v1453_v11, %v776_v9  ;;  %vm783_vm11 = vweird.f32 %v1453_v11  ;;  %vm835_vm12 = vmor %vm833_vm10, %vm834_vm9 }
 0xc26   :  { %v830_v14 = vsub.f32 1.0, %v829_v12  ;;  %vm784_vm14 = vmor %vm782_vm13, %vm783_vm11 }
 0xc27   :  { %v779_v15 = vsub.f32 1.0, %v778_v13 }
 0xc28   :  { %v831_v16 = vmul.f32 %v1451_v10, %v830_v14 }
 0xc29   :  { %v780_v17 = vmul.f32 %v1453_v11, %v779_v15 }
 0xc2a   :  { %v832_v18 = vadd.f32 %v1451_v10, %v831_v16 }
 0xc2b   :  { %v781_v21 = vadd.f32 %v1453_v11, %v780_v17 }
 0xc2c   :  { %v836_v23 = vsel %vm835_vm12, %v1451_v10, %v832_v18 }
 0xc2d   :  { %v785_v27 = vsel %vm784_vm14, %v1453_v11, %v781_v21  ;;  %v841_v36 = vsel %vm838_vm15, %v840_v26, %v836_v23 }
 0xc2e   :  { %v790_v24 = vsel %vm787_vm0, %v789_v37, %v785_v27  ;;  %v844_v28 = vmul.f32 %v841_v36, %v1771_v50 }
 0xc2f   :  { %v793_v44 = vmul.f32 %v790_v24, %v1766_v35 }
 0xc8a   :  { %v847_v30 = vpop.permute.xlu1 %846 }
 0xc8b   :  { %v849_v29 = vmul.f32 %v847_v30, %v841_v36 }
 0xc8c   :  { %v796_v40 = vpop.permute.xlu0 %795 }
 0xc8d   :  { %v798_v41 = vmul.f32 %v796_v40, %v790_v24  ;;  %851 = vrot.lane.b32.xlu0 %v849_v29, %s1528_s18 }
 0xc8f   :  { %800 = vrot.lane.b32.xlu2 %v798_v41, %s1528_s18 }
 0xce9   :  { %v801_v38 = vpop.permute.xlu2 %800 }
 0xcea   :  { %v1794_v45 = vadd.f32 %v801_v38, %v793_v44 }
 0xcec   :  { %1454 = vtanh.f32 %v1794_v45 }
 0xcf2   :  { %v1455_v46 = vpop.eup %1454 }
 0xcf3   :  { %806 = vrot.lane.b32.xlu1 %v1455_v46, %s1527_s17 }
 0xcff   :  { %v852_v47 = vpop.permute.xlu0 %851 }
 0xd00   :  { %v1799_v48 = vadd.f32 %v852_v47, %v844_v28 }
 0xd02   :  { %1456 = vtanh.f32 %v1799_v48 }
 0xd08   :  { %v1457_v49 = vpop.eup %1456 }
 0xd09   :  { %857 = vrot.lane.b32.xlu2 %v1457_v49, %s1527_s17 }
 0xd63   :  { %v858_v51 = vpop.permute.xlu2 %857 }
 0xd64   :  { %v860_v35 = vmul.f32 %v858_v51, %v841_v36 }
 0xd65   :  { %v807_v52 = vpop.permute.xlu1 %806 }
 0xd66   :  { %v861_v43 = vpack.c.bf16 %v860_v35, %v860_v35  ;;  %v809_v56 = vmul.f32 %v807_v52, %v790_v24 }
 0xd68   :  { %v862_v57 = vpack.c.bf16 %v809_v56, %v809_v56  ;;  %883 = vrot.lane.b32.xlu1 %v861_v43, %s1528_s18 }
 0xd6a   :  { %864 = vrot.lane.b32.xlu0 %v862_v57, %s1528_s18 }
 0xdda   :  { %v884_v58 = vpop.permute.xlu1 %883 }
 0xddb   :  { %1329 = vmatmul.msk.bf16.vlgmr.msrb.gmra.mxu1 %vm141_vm5, %v884_v58  ;;  %1331 = vmatmul.msk.bf16.vlgmr.msrb.gmra.mxu2 %vm141_vm5, %v884_v58  ;;  %v114_v58 = vadd.f32 %v1811_v61, %v1757_v55 }
 0xddc   :  { %v865_v50 = vpop.permute.xlu0 %864 }
 0xddd   :  { %1328 = vmatmul.msk.bf16.vlgmr.msra.gmra.mxu0 %vm141_vm5, %v865_v50 }
 0xe58   :  { %v897_v59 = vpop.f32.mrf.mxu1 }
 0xe5a   :  { %v878_v60 = vpop.f32.mrf.mxu0 }
 0xe5b   :  { %v898_v39 = vadd.f32 %v897_v59, %v878_v60 }
 0xe5d   :  { %v901_v1 = vadd.f32 %v1659_v42, %v898_v39 }
 0xe5e   :  { %v948_v63 = vpop.f32.mrf.mxu2 }
 0xe5f   :  { %1458 = vtanh.f32 %v901_v1  ;;  %v952_v3 = vadd.f32 %v948_v63, %v112_v62  ;;  %v1330_v31 = vmul.f32 -1.442695, %v901_v1  ;;  %v1840_v62 = vld [vmem:[%s1879_s6] ss:$0 sm:$0xff] }
 0xe60   :  { %v899_v0 = vpop.f32.mrf.mxu1 }
 0xe61   :  { %1460 = vtanh.f32 %v952_v3  ;;  %v1332_v7 = vmul.f32 -1.442695, %v952_v3 }
 0xe62   :  { %v880_v2 = vpop.f32.mrf.mxu0  ;;  %1462 = vpow2.f32 %v1330_v31 }
 0xe65   :  { %v1459_v4 = vpop.eup %1458 }
 0xe66   :  { %v950_v32 = vpop.f32.mrf.mxu2  ;;  %924 = vrot.lane.b32.xlu2 %v1459_v4, %s1527_s17 }
 0xe67   :  { %v1461_v6 = vpop.eup %1460 }
 0xe68   :  { %975 = vrot.lane.b32.xlu0 %v1461_v6, %s1527_s17  ;;  %v1463_v34 = vpop.eup %1462 }
 0xe69   :  { %v905_v33 = vadd.f32 1.0, %v1463_v34 }
 0xe6b   :  { %1464 = vrcp.f32 %v905_v33  ;;  %v917_v10 = vand.u32 2147483648, %v905_v33  ;;  %vm911_vm2 = vweird.f32 %v905_v33  ;;  %v915_v12 = vand.u32 2147483647, %v905_v33 }
 0xe6c   :  { %1466 = vpow2.f32 %v1332_v7 }
 0xe6d   :  { %v918_v14 = vor.u32 1.1754944e-38, %v917_v10  ;;  %vm916_vm4 = vcmp.eq.f32.partialorder %v915_v12, 8.507059e+37 }
 0xe71   :  { %v1465_v54 = vpop.eup %1464 }
 0xe72   :  { %v907_v42 = vmul.f32 %v1465_v54, %v905_v33  ;;  %v1467_v8 = vpop.eup %1466  ;;  %vm912_vm1 = vweird.f32 %v1465_v54 }
 0xe73   :  { %v956_v11 = vadd.f32 1.0, %v1467_v8  ;;  %vm913_vm3 = vmor %vm911_vm2, %vm912_vm1 }
 0xe74   :  { %v908_v5 = vsub.f32 1.0, %v907_v42 }
 0xe75   :  { %1468 = vrcp.f32 %v956_v11  ;;  %v968_v23 = vand.u32 2147483648, %v956_v11  ;;  %vm962_vm7 = vweird.f32 %v956_v11  ;;  %v966_v25 = vand.u32 2147483647, %v956_v11 }
 0xe76   :  { %v909_v53 = vmul.f32 %v1465_v54, %v908_v5 }
 0xe77   :  { %v969_v27 = vor.u32 1.1754944e-38, %v968_v23  ;;  %vm967_vm9 = vcmp.eq.f32.partialorder %v966_v25, 8.507059e+37 }
 0xe78   :  { %v910_v9 = vadd.f32 %v1465_v54, %v909_v53 }
 0xe7a   :  { %v914_v13 = vsel %vm913_vm3, %v1465_v54, %v910_v9 }
 0xe7b   :  { %v919_v16 = vsel %vm916_vm4, %v918_v14, %v914_v13  ;;  %v1469_v18 = vpop.eup %1468 }
 0xe7c   :  { %v958_v19 = vmul.f32 %v1469_v18, %v956_v11  ;;  %vm963_vm6 = vweird.f32 %v1469_v18  ;;  %v922_v29 = vmul.f32 %v919_v16, %v1794_v45 }
 0xe7d   :  { %vm964_vm8 = vmor %vm962_vm7, %vm963_vm6  ;;  %vm1237_vm7 = vcmask 25600  }
 0xe7e   :  { %v959_v20 = vsub.f32 1.0, %v958_v19 }
 0xe80   :  { %v960_v21 = vmul.f32 %v1469_v18, %v959_v20 }
 0xe82   :  { %v961_v22 = vadd.f32 %v1469_v18, %v960_v21 }
 0xe84   :  { %v965_v26 = vsel %vm964_vm8, %v1469_v18, %v961_v22 }
 0xe85   :  { %v970_v36 = vsel %vm967_vm9, %v969_v27, %v965_v26 }
 0xe86   :  { %v973_v41 = vmul.f32 %v970_v36, %v1799_v48 }
 0xec0   :  { %v925_v15 = vpop.permute.xlu2 %924 }
 0xec1   :  { %v927_v17 = vmul.f32 %v925_v15, %v919_v16 }
 0xec3   :  { %929 = vrot.lane.b32.xlu1 %v927_v17, %s1528_s18 }
 0xeda   :  { %v976_v30 = vpop.permute.xlu0 %975 }
 0xedb   :  { %v978_v37 = vmul.f32 %v976_v30, %v970_v36 }
 0xedd   :  { %980 = vrot.lane.b32.xlu2 %v978_v37, %s1528_s18 }
 0xf35   :  { %v930_v40 = vpop.permute.xlu1 %929 }
 0xf36   :  { %v1821_v24 = vadd.f32 %v930_v40, %v922_v29 }
 0xf37   :  { %v981_v44 = vpop.permute.xlu2 %980 }
 0xf38   :  { %1470 = vtanh.f32 %v1821_v24  ;;  %v1825_v38 = vadd.f32 %v981_v44, %v973_v41 }
 0xf3a   :  { %1472 = vtanh.f32 %v1825_v38 }
 0xf3e   :  { %v1471_v46 = vpop.eup %1470 }
 0xf3f   :  { %935 = vrot.lane.b32.xlu0 %v1471_v46, %s1527_s17 }
 0xf40   :  { %v1473_v28 = vpop.eup %1472 }
 0xf41   :  { %986 = vrot.lane.b32.xlu1 %v1473_v28, %s1527_s17 }
 0xfb1   :  { %v936_v47 = vpop.permute.xlu0 %935 }
 0xfb2   :  { %v938_v45 = vmul.f32 %v936_v47, %v919_v16 }
 0xfb3   :  { %v987_v51 = vpop.permute.xlu1 %986 }
 0xfb4   :  { %v991_v49 = vpack.c.bf16 %v938_v45, %v938_v45  ;;  %v989_v35 = vmul.f32 %v987_v51, %v970_v36 }
 0xfb6   :  { %993 = vrot.lane.b32.xlu2 %v991_v49, %s1528_s18  ;;  %v990_v48 = vpack.c.bf16 %v989_v35, %v989_v35 }
 0xfb8   :  { %1012 = vrot.lane.b32.xlu0 %v990_v48, %s1528_s18 }
0x1010   :  { %v994_v52 = vpop.permute.xlu2 %993 }
0x1011   :  { %1333 = vmatmul.msk.bf16.vlgmr.msrb.gmra.mxu3 %vm141_vm5, %v994_v52 }
0x102a   :  { %v1013_v43 = vpop.permute.xlu0 %1012 }
0x102b   :  { %1334 = vmatmul.msk.bf16.vlgmr.msrb.gmra.mxu0 %vm141_vm5, %v1013_v43  ;;  %1336 = vmatmul.msk.bf16.vlgmr.msra.gmra.mxu1 %vm141_vm5, %v1013_v43 }
0x1094   :  { %v1007_v56 = vpop.f32.mrf.mxu3 }
0x109c   :  { %v1009_v57 = vpop.f32.mrf.mxu3 }
0x10a8   :  { %v1026_v50 = vpop.f32.mrf.mxu0  ;;  %v1077_v59 = vpop.f32.mrf.mxu1 }
0x10a9   :  { %v1027_v60 = vadd.f32 %v1026_v50, %v1007_v56  ;;  %v1081_v39 = vadd.f32 %v1077_v59, %v114_v58 }
0x10ab   :  { %v1030_v1 = vadd.f32 %v1840_v62, %v1027_v60  ;;  %1474 = vtanh.f32 %v1081_v39  ;;  %v1337_v55 = vmul.f32 -1.442695, %v1081_v39 }
0x10ad   :  { %1476 = vtanh.f32 %v1030_v1  ;;  %v1335_v6 = vmul.f32 -1.442695, %v1030_v1 }
0x10ae   :  { %1478 = vpow2.f32 %v1337_v55 }
0x10b0   :  { %v1028_v63 = vpop.f32.mrf.mxu0  ;;  %v1079_v3 = vpop.f32.mrf.mxu1 }
0x10b1   :  { %v1475_v0 = vpop.eup %1474 }
0x10b2   :  { %1104 = vrot.lane.b32.xlu2 %v1475_v0, %s1527_s17 }
0x10b3   :  { %v1477_v2 = vpop.eup %1476 }
0x10b4   :  { %1053 = vrot.lane.b32.xlu1 %v1477_v2, %s1527_s17  ;;  %v1479_v61 = vpop.eup %1478 }
0x10b5   :  { %v1085_v4 = vadd.f32 1.0, %v1479_v61 }
0x10b7   :  { %1480 = vrcp.f32 %v1085_v4  ;;  %v1097_v5 = vand.u32 2147483648, %v1085_v4  ;;  %vm1091_vm11 = vweird.f32 %v1085_v4  ;;  %v1095_v53 = vand.u32 2147483647, %v1085_v4 }
0x10b8   :  { %1482 = vpow2.f32 %v1335_v6 }
0x10b9   :  { %v1098_v9 = vor.u32 1.1754944e-38, %v1097_v5  ;;  %vm1096_vm13 = vcmp.eq.f32.partialorder %v1095_v53, 8.507059e+37 }
0x10bd   :  { %v1481_v32 = vpop.eup %1480 }
0x10be   :  { %v1087_v31 = vmul.f32 %v1481_v32, %v1085_v4  ;;  %v1483_v54 = vpop.eup %1482  ;;  %vm1092_vm10 = vweird.f32 %v1481_v32 }
0x10bf   :  { %v1034_v7 = vadd.f32 1.0, %v1483_v54  ;;  %vm1093_vm12 = vmor %vm1091_vm11, %vm1092_vm10  ;;  %v1362_v54 = vld [vmem:[%s1880_s7 + $0x8] sm:$0xff] }
0x10c0   :  { %v1088_v34 = vsub.f32 1.0, %v1087_v31  ;;  %1230 = vmatpush.bf16.msra.mxu0 %v1362_v54 }
0x10c1   :  { %1484 = vrcp.f32 %v1034_v7  ;;  %v1046_v18 = vand.u32 2147483648, %v1034_v7  ;;  %vm1040_vm15 = vweird.f32 %v1034_v7  ;;  %v1044_v19 = vand.u32 2147483647, %v1034_v7 }
0x10c2   :  { %v1089_v33 = vmul.f32 %v1481_v32, %v1088_v34 }
0x10c3   :  { %v1047_v21 = vor.u32 1.1754944e-38, %v1046_v18  ;;  %vm1045_vm1 = vcmp.eq.f32.partialorder %v1044_v19, 8.507059e+37 }
0x10c4   :  { %v1090_v42 = vadd.f32 %v1481_v32, %v1089_v33 }
0x10c6   :  { %v1094_v8 = vsel %vm1093_vm12, %v1481_v32, %v1090_v42  ;;  %v1361_v42 = vld [vmem:[%s1880_s7] sm:$0xff] }
0x10c7   :  { %v1099_v11 = vsel %vm1096_vm13, %v1098_v9, %v1094_v8  ;;  %v1485_v13 = vpop.eup %1484  ;;  %1231 = vmatpush.bf16.msra.mxu0 %v1361_v42  ;;  %v1369_v9 = vld [vmem:[%s1881_s8] ss:$0 sm:$0xff] }
0x10c8   :  { %v1036_v14 = vmul.f32 %v1485_v13, %v1034_v7  ;;  %vm1041_vm14 = vweird.f32 %v1485_v13  ;;  %v1102_v26 = vmul.f32 %v1099_v11, %v1825_v38 }
0x10c9   :  { %vm1042_vm0 = vmor %vm1040_vm15, %vm1041_vm14 }
0x10ca   :  { %v1037_v15 = vsub.f32 1.0, %v1036_v14 }
0x10cc   :  { %v1038_v16 = vmul.f32 %v1485_v13, %v1037_v15 }
0x10ce   :  { %v1039_v17 = vadd.f32 %v1485_v13, %v1038_v16 }
0x10d0   :  { %v1043_v20 = vsel %vm1042_vm0, %v1485_v13, %v1039_v17 }
0x10d1   :  { %v1048_v23 = vsel %vm1045_vm1, %v1047_v21, %v1043_v20 }
0x10d2   :  { %v1051_v37 = vmul.f32 %v1048_v23, %v1821_v24 }
0x110c   :  { %v1105_v10 = vpop.permute.xlu2 %1104 }
0x110d   :  { %v1107_v12 = vmul.f32 %v1105_v10, %v1099_v11 }
0x110f   :  { %1109 = vrot.lane.b32.xlu1 %v1107_v12, %s1528_s18 }
0x1126   :  { %v1054_v22 = vpop.permute.xlu1 %1053 }
0x1127   :  { %v1056_v25 = vmul.f32 %v1054_v22, %v1048_v23 }
0x1129   :  { %1058 = vrot.lane.b32.xlu0 %v1056_v25, %s1528_s18 }
0x1181   :  { %v1110_v27 = vpop.permute.xlu1 %1109 }
0x1182   :  { %v1112_v30 = vadd.f32 %v1110_v27, %v1102_v26 }
0x1184   :  { %1486 = vtanh.f32 %v1112_v30 }
0x118a   :  { %v1487_v36 = vpop.eup %1486 }
0x118b   :  { %1115 = vrot.lane.b32.xlu0 %v1487_v36, %s1527_s17 }
0x119b   :  { %v1059_v29 = vpop.permute.xlu0 %1058 }
0x119c   :  { %v1061_v40 = vadd.f32 %v1059_v29, %v1051_v37 }
0x119e   :  { %1488 = vtanh.f32 %v1061_v40 }
0x11a4   :  { %v1489_v41 = vpop.eup %1488 }
0x11a5   :  { %1064 = vrot.lane.b32.xlu2 %v1489_v41, %s1527_s17 }
0x11fd   :  { %v1116_v44 = vpop.permute.xlu0 %1115 }
0x11fe   :  { %v1118_v46 = vmul.f32 %v1116_v44, %v1099_v11 }
0x11ff   :  { %v1065_v28 = vpop.permute.xlu2 %1064 }
0x1200   :  { %v1119_v47 = vpack.c.bf16 %v1118_v46, %v1118_v46  ;;  %v1067_v45 = vmul.f32 %v1065_v28, %v1048_v23 }
0x1202   :  { %v1120_v38 = vpack.c.bf16 %v1067_v45, %v1067_v45  ;;  %1141 = vrot.lane.b32.xlu2 %v1119_v47, %s1528_s18 }
0x1204   :  { %1122 = vrot.lane.b32.xlu1 %v1120_v38, %s1528_s18 }
0x125c   :  { %v1142_v49 = vpop.permute.xlu2 %1141 }
0x125d   :  { %1339 = vmatmul.msk.bf16.vlgmr.msra.gmra.mxu3 %vm141_vm5, %v1142_v49 }
0x1276   :  { %v1123_v24 = vpop.permute.xlu1 %1122 }
0x1277   :  { %1338 = vmatmul.msk.bf16.vlgmr.msra.gmra.mxu2 %vm141_vm5, %v1123_v24 }
0x12e0   :  { %v1155_v51 = vpop.f32.mrf.mxu3 }
0x12e8   :  { %v1157_v35 = vpop.f32.mrf.mxu3 }
0x12fa   :  { %v1136_v48 = vpop.f32.mrf.mxu2 }
0x12fb   :  { %v1156_v52 = vadd.f32 %v1155_v51, %v1136_v48 }
0x12fd   :  { %v1159_v43 = vadd.f32 %v1840_v62, %v1156_v52 }
0x12ff   :  { %1490 = vtanh.f32 %v1159_v43  ;;  %v1340_v58 = vmul.f32 -1.442695, %v1159_v43 }
0x1301   :  { %1492 = vpow2.f32 %v1340_v58 }
0x1302   :  { %v1138_v56 = vpop.f32.mrf.mxu2 }
0x1305   :  { %v1491_v57 = vpop.eup %1490 }
0x1306   :  { %1182 = vrot.lane.b32.xlu0 %v1491_v57, %s1527_s17 }
0x1307   :  { %v1493_v50 = vpop.eup %1492 }
0x1308   :  { %v1163_v59 = vadd.f32 1.0, %v1493_v50 }
0x130a   :  { %1494 = vrcp.f32 %v1163_v59  ;;  %v1175_v0 = vand.u32 2147483648, %v1163_v59  ;;  %vm1169_vm3 = vweird.f32 %v1163_v59  ;;  %v1173_v2 = vand.u32 2147483647, %v1163_v59 }
0x130c   :  { %v1176_v55 = vor.u32 1.1754944e-38, %v1175_v0  ;;  %vm1174_vm6 = vcmp.eq.f32.partialorder %v1173_v2, 8.507059e+37 }
0x1310   :  { %v1495_v60 = vpop.eup %1494 }
0x1311   :  { %v1165_v39 = vmul.f32 %v1495_v60, %v1163_v59  ;;  %vm1170_vm2 = vweird.f32 %v1495_v60 }
0x1312   :  { %vm1171_vm4 = vmor %vm1169_vm3, %vm1170_vm2 }
0x1313   :  { %v1166_v1 = vsub.f32 1.0, %v1165_v39 }
0x1315   :  { %v1167_v63 = vmul.f32 %v1495_v60, %v1166_v1 }
0x1317   :  { %v1168_v3 = vadd.f32 %v1495_v60, %v1167_v63 }
0x1319   :  { %v1172_v62 = vsel %vm1171_vm4, %v1495_v60, %v1168_v3 }
0x131a   :  { %v1177_v4 = vsel %vm1174_vm6, %v1176_v55, %v1172_v62 }
0x131b   :  { %v1180_v6 = vmul.f32 %v1177_v4, %v1061_v40 }
0x1378   :  { %v1183_v61 = vpop.permute.xlu0 %1182 }
0x1379   :  { %v1185_v32 = vmul.f32 %v1183_v61, %v1177_v4 }
0x137b   :  { %1187 = vrot.lane.b32.xlu1 %v1185_v32, %s1528_s18 }
0x13ed   :  { %v1188_v31 = vpop.permute.xlu1 %1187 }
0x13ee   :  { %v1190_v34 = vadd.f32 %v1188_v31, %v1180_v6 }
0x13f0   :  { %1496 = vtanh.f32 %v1190_v34 }
0x13f6   :  { %v1497_v33 = vpop.eup %1496 }
0x13f7   :  { %1193 = vrot.lane.b32.xlu2 %v1497_v33, %s1527_s17  ;;  %s1529_s17 = smov [#allocation2]  }
0x13f8   :  { %s1244_s19 = sshll.u32 %s1529_s17, 4  ;;  %s1245_s19 = int_to_ptr.vmem [resolvable:$true] %s1244_s19 }
0x1451   :  { %v1194_v7 = vpop.permute.xlu2 %1193 }
0x1452   :  { %v1196_v5 = vmul.f32 %v1194_v7, %v1177_v4 }
0x1454   :  { %v1197_v53 = vpack.c.bf16 %v1196_v5, %v1196_v5 }
0x1456   :  { %1207 = vrot.lane.b32.xlu0 %v1197_v53, %s1528_s18 }
0x14c8   :  { %v1208_v8 = vpop.permute.xlu0 %1207 }
0x14c9   :  { %1349 = vmatmul.msk.bf16.vlgmr.msra.gmra.mxu0 %vm141_vm5, %v1208_v8 }
0x1546   :  { %v1233_v10 = vpop.f32.mrf.mxu0 }
0x1547   :  { %v1234_v11 = vadd.f32 %v1369_v9, %v1233_v10 }
0x1549   :  { %1238 = vst.msk [vmem:[#allocation2] sm:$0x3] %vm1237_vm7, %v1234_v11 }
0x154a   :  { %1249 = dma.vmem_to_hbm [thread:$0]  %s1245_s19, 32, %s1247_s22, [#allocation3]  }
0x154e   :  { %v1235_v12 = vpop.f32.mrf.mxu0 }
0x154f   :  { %1524 = dma.done.wait [#allocation3], 32  }
0x1550   :  { %1525 = vsyncadd [#allocation3], 4294967264 }
0x1551   :  { %1254 = vsyncpa [#allocation3], 1 }

</bundles_post_ra>
